<compile_context>
chip_gen: v6e
topology: v6e:2x2x1
jax: 0.10.0
libtpu: 0.0.40
codegen_flags: <defaults>
</compile_context>

<pallas_src>
import functools

import jax
import jax.numpy as jnp
from jax.experimental import pallas as pl
from jax.experimental.pallas import tpu as pltpu


def _drag_seq_kernel(seq_len, feat_ref, w_ref, b_ref, fc_ref, out_ref):
    """GRU rollout with zero inputs, then one batched Linear(hidden, 2).

    PyTorch GRU equations with x_t = 0:
      r_t = sigmoid(b_ir + W_hr h + b_hr)
      z_t = sigmoid(b_iz + W_hz h + b_hz)
      n_t = tanh(b_in + r_t * (W_hn h + b_hn))
      h_t = (1 - z_t) * n_t + z_t * h  ==  n_t + z_t * (h - n_t)

    Everything is zero-padded so the hidden dim is a multiple of 128 lanes
    (Hp); the padded lanes stay exactly zero through the recurrence.
    """
    _, Hp = feat_ref.shape
    h = feat_ref[...]                    # (Bb, Hp): initial hidden = features
    w = w_ref[...]                       # (Hp, 3Hp) = [W_hr^T | W_hz^T | W_hn^T]
    b_gates = b_ref[0:1, :]              # (1, 3Hp) = [b_ir+b_hr | b_iz+b_hz | b_hn]
    b_in = b_ref[1:2, 0:Hp]              # (1, Hp)  = b_in

    # TODO(synk): keep `w` stationary in the MXU across the unrolled steps via
    # pltpu.matmul_push_rhs / matmul_acc_lhs / matmul_pop (needs splitting the
    # (Hp, 3Hp) fused weight into per-MXU-pass tiles); jnp.dot re-pushes it
    # every step.
    hs = []
    for _ in range(seq_len):             # static unroll; seq_len is small
        g = jnp.dot(h, w, preferred_element_type=jnp.float32) + b_gates  # (Bb, 3Hp)
        rz = jax.nn.sigmoid(g[:, 0:2 * Hp])          # fused r+z: one EUP pass
        r = rz[:, 0:Hp]
        z = rz[:, Hp:2 * Hp]
        n = jnp.tanh(b_in + r * g[:, 2 * Hp:3 * Hp])
        h = n + z * (h - n)
        hs.append(h)                     # stays in vregs; no VMEM scratch

    hist = jnp.concatenate(hs, axis=0)   # (S*Bb, Hp), t-major, tile-aligned
    fcw = fc_ref[0:Hp, :]                # (Hp, 128) = fc.weight^T zero-padded
    fcb = fc_ref[Hp:Hp + 1, :]           # (1, 128)  = fc.bias   zero-padded
    # Single batched fc matmul + one lane-dense (128-wide) unmasked store.
    out_ref[...] = (
        jnp.dot(hist, fcw, preferred_element_type=jnp.float32) + fcb)


def _pick_b_block(batch_pad):
    """Largest batch tile that divides the (8-padded) batch."""
    for cand in (512, 256, 128, 64, 32, 16, 8):
        if batch_pad % cand == 0:
            return cand
    return batch_pad


def drag_sequence_generator(features, params, sequence_length):
    """features: (B, H) float32.  params in PyTorch layout:
       w_hh: (3H, H), b_ih: (3H,), b_hh: (3H,), fc_w: (2, H), fc_b: (2,)."""
    B, H = features.shape
    w_hh, b_ih, b_hh, fc_w, fc_b = params
    f32 = jnp.float32
    S = int(sequence_length)
    Hp = ((H + 127) // 128) * 128        # lane-aligned (128) padded hidden dim
    B_pad = ((B + 7) // 8) * 8           # sublane-aligned (8) padded batch

    def pad_mat(m):                      # (H, H) -> (Hp, Hp), zero pad
        return jnp.zeros((Hp, Hp), f32).at[:H, :H].set(m.astype(f32))

    def pad_vec(v):                      # (H,) -> (Hp,), zero pad
        return jnp.zeros((Hp,), f32).at[:H].set(v.astype(f32))

    # Fused recurrent weight (Hp, 3Hp): per-gate blocks W_hr^T | W_hz^T | W_hn^T,
    # each padded to 128 lanes so the kernel's gate slices are vreg-aligned.
    w_fused = jnp.concatenate(
        [pad_mat(w_hh[0:H, :].T),
         pad_mat(w_hh[H:2 * H, :].T),
         pad_mat(w_hh[2 * H:3 * H, :].T)], axis=1)
    # Packed biases (2, 3Hp): row 0 = fused gate biases, row 1 = [b_in | 0 | 0].
    b_row0 = jnp.concatenate([pad_vec(b_ih[0:H] + b_hh[0:H]),
                              pad_vec(b_ih[H:2 * H] + b_hh[H:2 * H]),
                              pad_vec(b_hh[2 * H:3 * H])])
    b_row1 = jnp.concatenate([pad_vec(b_ih[2 * H:3 * H]),
                              jnp.zeros((2 * Hp,), f32)])
    b_packed = jnp.stack([b_row0, b_row1], axis=0)
    # Packed fc (Hp+1, 128): rows 0..Hp-1 = fc.weight^T, row Hp = fc.bias,
    # zero-padded to 128 output lanes so the final store is unmasked.
    fc_packed = jnp.zeros((Hp + 1, 128), f32)
    fc_packed = fc_packed.at[0:H, 0:2].set(fc_w.T.astype(f32))
    fc_packed = fc_packed.at[Hp, 0:2].set(fc_b.astype(f32))

    feat_pad = jnp.zeros((B_pad, Hp), f32).at[:B, :H].set(features.astype(f32))

    Bb = _pick_b_block(B_pad)            # batch tile; grid shards over B blocks
    nb = B_pad // Bb

    # TODO(synk): at production batch, cast matmul operands to bfloat16 (keep
    # VPU/EUP math in f32) and cap the tile via vmem_limit_bytes for v7x's
    # smaller (64 MiB) VMEM.
    out_flat = pl.pallas_call(
        functools.partial(_drag_seq_kernel, S),
        out_shape=jax.ShapeDtypeStruct((nb * S * Bb, 128), f32),
        grid=(nb,),
        in_specs=[
            pl.BlockSpec((Bb, Hp), lambda i: (i, 0)),
            pl.BlockSpec((Hp, 3 * Hp), lambda i: (0, 0)),   # resident weights
            pl.BlockSpec((2, 3 * Hp), lambda i: (0, 0)),    # resident biases
            pl.BlockSpec((Hp + 1, 128), lambda i: (0, 0)),  # resident fc
        ],
        out_specs=pl.BlockSpec((S * Bb, 128), lambda i: (i, 0)),
        compiler_params=pltpu.CompilerParams(
            dimension_semantics=("parallel",)),  # B blocks shard across TCs
    )(feat_pad, w_fused, b_packed, fc_packed)

    # Per-block t-major (nb, S, Bb, 2) -> (B, S, 2), matching PyTorch output.
    out = out_flat[:, 0:2].reshape(nb, S, Bb, 2)
    out = jnp.transpose(out, (0, 2, 1, 3)).reshape(B_pad, S, 2)
    return out[:B]


if __name__ == "__main__":
    # input_dim == hidden_dim is required by the PyTorch forward.
    B, H, S = 2, 32, 8

    key = jax.random.PRNGKey(0)
    k1, k2, k3, k4, k5, k6 = jax.random.split(key, 6)
    bound = 1.0 / (H ** 0.5)   # PyTorch default U(-1/sqrt(H), 1/sqrt(H))
    u = lambda k, shape: jax.random.uniform(k, shape, jnp.float32, -bound, bound)

    w_hh = u(k1, (3 * H, H))
    b_ih = u(k2, (3 * H,))
    b_hh = u(k3, (3 * H,))
    fc_w = u(k4, (2, H))
    fc_b = u(k5, (2,))
    features = jax.random.normal(k6, (B, H), jnp.float32)

    out = drag_sequence_generator(features, (w_hh, b_ih, b_hh, fc_w, fc_b), S)
    out = jax.block_until_ready(out)

    # Pure-JAX reference (mirrors torch.nn.GRU + Linear with zero inputs).
    def ref(feat):
        h = feat
        outs = []
        for _ in range(S):
            g = h @ w_hh.T + b_hh
            r = jax.nn.sigmoid(b_ih[:H] + g[:, :H])
            z = jax.nn.sigmoid(b_ih[H:2 * H] + g[:, H:2 * H])
            n = jnp.tanh(b_ih[2 * H:] + r * g[:, 2 * H:])
            h = (1.0 - z) * n + z * h
            outs.append(h @ fc_w.T + fc_b)
        return jnp.stack(outs, axis=1)

    expected = ref(features)
    assert out.shape == (B, S, 2), out.shape
    assert jnp.allclose(out, expected, atol=1e-5, rtol=1e-5), (
        float(jnp.max(jnp.abs(out - expected))))
    print("KERNEL_OK")
</pallas_src>

<mosaic_0001>
module attributes {stable_mosaic.version = 11 : i64} {
  func.func @_drag_seq_kernel(%arg0: i32, %arg1: memref<8x128xf32, #tpu.memory_space<vmem>>, %arg2: memref<128x384xf32, #tpu.memory_space<vmem>>, %arg3: memref<2x384xf32, #tpu.memory_space<vmem>>, %arg4: memref<129x128xf32, #tpu.memory_space<vmem>>, %arg5: memref<64x128xf32, #tpu.memory_space<vmem>>) attributes {dimension_semantics = [#tpu.dimension_semantics<parallel>], iteration_bounds = array<i64: 1>, scalar_prefetch = 0 : i64, scratch_operands = 0 : i64, tpu.core_type = #tpu.core_type<tc>, window_params = [{transform_indices = @transform_0, window_bounds = array<i64: 8, 128>}, {pipeline_mode = #tpu.pipeline_mode<synchronous>, transform_indices = @transform_1, window_bounds = array<i64: 128, 384>}, {pipeline_mode = #tpu.pipeline_mode<synchronous>, transform_indices = @transform_2, window_bounds = array<i64: 2, 384>}, {pipeline_mode = #tpu.pipeline_mode<synchronous>, transform_indices = @transform_3, window_bounds = array<i64: 129, 128>}, {transform_indices = @transform_4, window_bounds = array<i64: 64, 128>}]} {
    %c0 = arith.constant 0 : index
    %c0_0 = arith.constant 0 : index
    %0 = vector.load %arg1[%c0, %c0_0] : memref<8x128xf32, #tpu.memory_space<vmem>>, vector<8x128xf32>
    %c0_1 = arith.constant 0 : index
    %c0_2 = arith.constant 0 : index
    %1 = vector.load %arg2[%c0_1, %c0_2] : memref<128x384xf32, #tpu.memory_space<vmem>>, vector<128x384xf32>
    %c0_3 = arith.constant 0 : index
    %c0_4 = arith.constant 0 : index
    %2 = vector.load %arg3[%c0_3, %c0_4] : memref<2x384xf32, #tpu.memory_space<vmem>>, vector<1x384xf32>
    %c1 = arith.constant 1 : index
    %c0_5 = arith.constant 0 : index
    %3 = vector.load %arg3[%c1, %c0_5] : memref<2x384xf32, #tpu.memory_space<vmem>>, vector<1x128xf32>
    %cst = arith.constant dense<0.000000e+00> : vector<8x384xf32>
    %4 = tpu.matmul %0, %1, %cst {dimension_numbers = #tpu.dot_dimension_numbers<[1], [0], [0], [1], [0, 0, 1, 1], [], []>} : vector<8x128xf32>, vector<128x384xf32>, vector<8x384xf32> -> vector<8x384xf32>
    %5 = vector.broadcast %2 : vector<1x384xf32> to vector<8x384xf32>
    %6 = arith.addf %4, %5 : vector<8x384xf32>
    %7 = vector.extract_strided_slice %6 {offsets = [0, 0], sizes = [8, 256], strides = [1, 1]} : vector<8x384xf32> to vector<8x256xf32>
    %8 = arith.negf %7 : vector<8x256xf32>
    %9 = math.exp %8 : vector<8x256xf32>
    %cst_6 = arith.constant 1.000000e+00 : f32
    %10 = vector.broadcast %cst_6 : f32 to vector<8x256xf32>
    %11 = arith.addf %10, %9 : vector<8x256xf32>
    %12 = arith.divf %10, %11 : vector<8x256xf32>
    %13 = vector.extract_strided_slice %12 {offsets = [0, 0], sizes = [8, 128], strides = [1, 1]} : vector<8x256xf32> to vector<8x128xf32>
    %14 = vector.extract_strided_slice %12 {offsets = [0, 128], sizes = [8, 128], strides = [1, 1]} : vector<8x256xf32> to vector<8x128xf32>
    %15 = vector.extract_strided_slice %6 {offsets = [0, 256], sizes = [8, 128], strides = [1, 1]} : vector<8x384xf32> to vector<8x128xf32>
    %16 = arith.mulf %13, %15 : vector<8x128xf32>
    %17 = vector.broadcast %3 : vector<1x128xf32> to vector<8x128xf32>
    %18 = arith.addf %17, %16 : vector<8x128xf32>
    %19 = math.tanh %18 : vector<8x128xf32>
    %20 = arith.subf %0, %19 : vector<8x128xf32>
    %21 = arith.mulf %14, %20 : vector<8x128xf32>
    %22 = arith.addf %19, %21 : vector<8x128xf32>
    %cst_7 = arith.constant dense<0.000000e+00> : vector<8x384xf32>
    %23 = tpu.matmul %22, %1, %cst_7 {dimension_numbers = #tpu.dot_dimension_numbers<[1], [0], [0], [1], [0, 0, 1, 1], [], []>} : vector<8x128xf32>, vector<128x384xf32>, vector<8x384xf32> -> vector<8x384xf32>
    %24 = vector.broadcast %2 : vector<1x384xf32> to vector<8x384xf32>
    %25 = arith.addf %23, %24 : vector<8x384xf32>
    %26 = vector.extract_strided_slice %25 {offsets = [0, 0], sizes = [8, 256], strides = [1, 1]} : vector<8x384xf32> to vector<8x256xf32>
    %27 = arith.negf %26 : vector<8x256xf32>
    %28 = math.exp %27 : vector<8x256xf32>
    %cst_8 = arith.constant 1.000000e+00 : f32
    %29 = vector.broadcast %cst_8 : f32 to vector<8x256xf32>
    %30 = arith.addf %29, %28 : vector<8x256xf32>
    %31 = arith.divf %29, %30 : vector<8x256xf32>
    %32 = vector.extract_strided_slice %31 {offsets = [0, 0], sizes = [8, 128], strides = [1, 1]} : vector<8x256xf32> to vector<8x128xf32>
    %33 = vector.extract_strided_slice %31 {offsets = [0, 128], sizes = [8, 128], strides = [1, 1]} : vector<8x256xf32> to vector<8x128xf32>
    %34 = vector.extract_strided_slice %25 {offsets = [0, 256], sizes = [8, 128], strides = [1, 1]} : vector<8x384xf32> to vector<8x128xf32>
    %35 = arith.mulf %32, %34 : vector<8x128xf32>
    %36 = vector.broadcast %3 : vector<1x128xf32> to vector<8x128xf32>
    %37 = arith.addf %36, %35 : vector<8x128xf32>
    %38 = math.tanh %37 : vector<8x128xf32>
    %39 = arith.subf %22, %38 : vector<8x128xf32>
    %40 = arith.mulf %33, %39 : vector<8x128xf32>
    %41 = arith.addf %38, %40 : vector<8x128xf32>
    %cst_9 = arith.constant dense<0.000000e+00> : vector<8x384xf32>
    %42 = tpu.matmul %41, %1, %cst_9 {dimension_numbers = #tpu.dot_dimension_numbers<[1], [0], [0], [1], [0, 0, 1, 1], [], []>} : vector<8x128xf32>, vector<128x384xf32>, vector<8x384xf32> -> vector<8x384xf32>
    %43 = vector.broadcast %2 : vector<1x384xf32> to vector<8x384xf32>
    %44 = arith.addf %42, %43 : vector<8x384xf32>
    %45 = vector.extract_strided_slice %44 {offsets = [0, 0], sizes = [8, 256], strides = [1, 1]} : vector<8x384xf32> to vector<8x256xf32>
    %46 = arith.negf %45 : vector<8x256xf32>
    %47 = math.exp %46 : vector<8x256xf32>
    %cst_10 = arith.constant 1.000000e+00 : f32
    %48 = vector.broadcast %cst_10 : f32 to vector<8x256xf32>
    %49 = arith.addf %48, %47 : vector<8x256xf32>
    %50 = arith.divf %48, %49 : vector<8x256xf32>
    %51 = vector.extract_strided_slice %50 {offsets = [0, 0], sizes = [8, 128], strides = [1, 1]} : vector<8x256xf32> to vector<8x128xf32>
    %52 = vector.extract_strided_slice %50 {offsets = [0, 128], sizes = [8, 128], strides = [1, 1]} : vector<8x256xf32> to vector<8x128xf32>
    %53 = vector.extract_strided_slice %44 {offsets = [0, 256], sizes = [8, 128], strides = [1, 1]} : vector<8x384xf32> to vector<8x128xf32>
    %54 = arith.mulf %51, %53 : vector<8x128xf32>
    %55 = vector.broadcast %3 : vector<1x128xf32> to vector<8x128xf32>
    %56 = arith.addf %55, %54 : vector<8x128xf32>
    %57 = math.tanh %56 : vector<8x128xf32>
    %58 = arith.subf %41, %57 : vector<8x128xf32>
    %59 = arith.mulf %52, %58 : vector<8x128xf32>
    %60 = arith.addf %57, %59 : vector<8x128xf32>
    %cst_11 = arith.constant dense<0.000000e+00> : vector<8x384xf32>
    %61 = tpu.matmul %60, %1, %cst_11 {dimension_numbers = #tpu.dot_dimension_numbers<[1], [0], [0], [1], [0, 0, 1, 1], [], []>} : vector<8x128xf32>, vector<128x384xf32>, vector<8x384xf32> -> vector<8x384xf32>
    %62 = vector.broadcast %2 : vector<1x384xf32> to vector<8x384xf32>
    %63 = arith.addf %61, %62 : vector<8x384xf32>
    %64 = vector.extract_strided_slice %63 {offsets = [0, 0], sizes = [8, 256], strides = [1, 1]} : vector<8x384xf32> to vector<8x256xf32>
    %65 = arith.negf %64 : vector<8x256xf32>
    %66 = math.exp %65 : vector<8x256xf32>
    %cst_12 = arith.constant 1.000000e+00 : f32
    %67 = vector.broadcast %cst_12 : f32 to vector<8x256xf32>
    %68 = arith.addf %67, %66 : vector<8x256xf32>
    %69 = arith.divf %67, %68 : vector<8x256xf32>
    %70 = vector.extract_strided_slice %69 {offsets = [0, 0], sizes = [8, 128], strides = [1, 1]} : vector<8x256xf32> to vector<8x128xf32>
    %71 = vector.extract_strided_slice %69 {offsets = [0, 128], sizes = [8, 128], strides = [1, 1]} : vector<8x256xf32> to vector<8x128xf32>
    %72 = vector.extract_strided_slice %63 {offsets = [0, 256], sizes = [8, 128], strides = [1, 1]} : vector<8x384xf32> to vector<8x128xf32>
    %73 = arith.mulf %70, %72 : vector<8x128xf32>
    %74 = vector.broadcast %3 : vector<1x128xf32> to vector<8x128xf32>
    %75 = arith.addf %74, %73 : vector<8x128xf32>
    %76 = math.tanh %75 : vector<8x128xf32>
    %77 = arith.subf %60, %76 : vector<8x128xf32>
    %78 = arith.mulf %71, %77 : vector<8x128xf32>
    %79 = arith.addf %76, %78 : vector<8x128xf32>
    %cst_13 = arith.constant dense<0.000000e+00> : vector<8x384xf32>
    %80 = tpu.matmul %79, %1, %cst_13 {dimension_numbers = #tpu.dot_dimension_numbers<[1], [0], [0], [1], [0, 0, 1, 1], [], []>} : vector<8x128xf32>, vector<128x384xf32>, vector<8x384xf32> -> vector<8x384xf32>
    %81 = vector.broadcast %2 : vector<1x384xf32> to vector<8x384xf32>
    %82 = arith.addf %80, %81 : vector<8x384xf32>
    %83 = vector.extract_strided_slice %82 {offsets = [0, 0], sizes = [8, 256], strides = [1, 1]} : vector<8x384xf32> to vector<8x256xf32>
    %84 = arith.negf %83 : vector<8x256xf32>
    %85 = math.exp %84 : vector<8x256xf32>
    %cst_14 = arith.constant 1.000000e+00 : f32
    %86 = vector.broadcast %cst_14 : f32 to vector<8x256xf32>
    %87 = arith.addf %86, %85 : vector<8x256xf32>
    %88 = arith.divf %86, %87 : vector<8x256xf32>
    %89 = vector.extract_strided_slice %88 {offsets = [0, 0], sizes = [8, 128], strides = [1, 1]} : vector<8x256xf32> to vector<8x128xf32>
    %90 = vector.extract_strided_slice %88 {offsets = [0, 128], sizes = [8, 128], strides = [1, 1]} : vector<8x256xf32> to vector<8x128xf32>
    %91 = vector.extract_strided_slice %82 {offsets = [0, 256], sizes = [8, 128], strides = [1, 1]} : vector<8x384xf32> to vector<8x128xf32>
    %92 = arith.mulf %89, %91 : vector<8x128xf32>
    %93 = vector.broadcast %3 : vector<1x128xf32> to vector<8x128xf32>
    %94 = arith.addf %93, %92 : vector<8x128xf32>
    %95 = math.tanh %94 : vector<8x128xf32>
    %96 = arith.subf %79, %95 : vector<8x128xf32>
    %97 = arith.mulf %90, %96 : vector<8x128xf32>
    %98 = arith.addf %95, %97 : vector<8x128xf32>
    %cst_15 = arith.constant dense<0.000000e+00> : vector<8x384xf32>
    %99 = tpu.matmul %98, %1, %cst_15 {dimension_numbers = #tpu.dot_dimension_numbers<[1], [0], [0], [1], [0, 0, 1, 1], [], []>} : vector<8x128xf32>, vector<128x384xf32>, vector<8x384xf32> -> vector<8x384xf32>
    %100 = vector.broadcast %2 : vector<1x384xf32> to vector<8x384xf32>
    %101 = arith.addf %99, %100 : vector<8x384xf32>
    %102 = vector.extract_strided_slice %101 {offsets = [0, 0], sizes = [8, 256], strides = [1, 1]} : vector<8x384xf32> to vector<8x256xf32>
    %103 = arith.negf %102 : vector<8x256xf32>
    %104 = math.exp %103 : vector<8x256xf32>
    %cst_16 = arith.constant 1.000000e+00 : f32
    %105 = vector.broadcast %cst_16 : f32 to vector<8x256xf32>
    %106 = arith.addf %105, %104 : vector<8x256xf32>
    %107 = arith.divf %105, %106 : vector<8x256xf32>
    %108 = vector.extract_strided_slice %107 {offsets = [0, 0], sizes = [8, 128], strides = [1, 1]} : vector<8x256xf32> to vector<8x128xf32>
    %109 = vector.extract_strided_slice %107 {offsets = [0, 128], sizes = [8, 128], strides = [1, 1]} : vector<8x256xf32> to vector<8x128xf32>
    %110 = vector.extract_strided_slice %101 {offsets = [0, 256], sizes = [8, 128], strides = [1, 1]} : vector<8x384xf32> to vector<8x128xf32>
    %111 = arith.mulf %108, %110 : vector<8x128xf32>
    %112 = vector.broadcast %3 : vector<1x128xf32> to vector<8x128xf32>
    %113 = arith.addf %112, %111 : vector<8x128xf32>
    %114 = math.tanh %113 : vector<8x128xf32>
    %115 = arith.subf %98, %114 : vector<8x128xf32>
    %116 = arith.mulf %109, %115 : vector<8x128xf32>
    %117 = arith.addf %114, %116 : vector<8x128xf32>
    %cst_17 = arith.constant dense<0.000000e+00> : vector<8x384xf32>
    %118 = tpu.matmul %117, %1, %cst_17 {dimension_numbers = #tpu.dot_dimension_numbers<[1], [0], [0], [1], [0, 0, 1, 1], [], []>} : vector<8x128xf32>, vector<128x384xf32>, vector<8x384xf32> -> vector<8x384xf32>
    %119 = vector.broadcast %2 : vector<1x384xf32> to vector<8x384xf32>
    %120 = arith.addf %118, %119 : vector<8x384xf32>
    %121 = vector.extract_strided_slice %120 {offsets = [0, 0], sizes = [8, 256], strides = [1, 1]} : vector<8x384xf32> to vector<8x256xf32>
    %122 = arith.negf %121 : vector<8x256xf32>
    %123 = math.exp %122 : vector<8x256xf32>
    %cst_18 = arith.constant 1.000000e+00 : f32
    %124 = vector.broadcast %cst_18 : f32 to vector<8x256xf32>
    %125 = arith.addf %124, %123 : vector<8x256xf32>
    %126 = arith.divf %124, %125 : vector<8x256xf32>
    %127 = vector.extract_strided_slice %126 {offsets = [0, 0], sizes = [8, 128], strides = [1, 1]} : vector<8x256xf32> to vector<8x128xf32>
    %128 = vector.extract_strided_slice %126 {offsets = [0, 128], sizes = [8, 128], strides = [1, 1]} : vector<8x256xf32> to vector<8x128xf32>
    %129 = vector.extract_strided_slice %120 {offsets = [0, 256], sizes = [8, 128], strides = [1, 1]} : vector<8x384xf32> to vector<8x128xf32>
    %130 = arith.mulf %127, %129 : vector<8x128xf32>
    %131 = vector.broadcast %3 : vector<1x128xf32> to vector<8x128xf32>
    %132 = arith.addf %131, %130 : vector<8x128xf32>
    %133 = math.tanh %132 : vector<8x128xf32>
    %134 = arith.subf %117, %133 : vector<8x128xf32>
    %135 = arith.mulf %128, %134 : vector<8x128xf32>
    %136 = arith.addf %133, %135 : vector<8x128xf32>
    %cst_19 = arith.constant dense<0.000000e+00> : vector<8x384xf32>
    %137 = tpu.matmul %136, %1, %cst_19 {dimension_numbers = #tpu.dot_dimension_numbers<[1], [0], [0], [1], [0, 0, 1, 1], [], []>} : vector<8x128xf32>, vector<128x384xf32>, vector<8x384xf32> -> vector<8x384xf32>
    %138 = vector.broadcast %2 : vector<1x384xf32> to vector<8x384xf32>
    %139 = arith.addf %137, %138 : vector<8x384xf32>
    %140 = vector.extract_strided_slice %139 {offsets = [0, 0], sizes = [8, 256], strides = [1, 1]} : vector<8x384xf32> to vector<8x256xf32>
    %141 = arith.negf %140 : vector<8x256xf32>
    %142 = math.exp %141 : vector<8x256xf32>
    %cst_20 = arith.constant 1.000000e+00 : f32
    %143 = vector.broadcast %cst_20 : f32 to vector<8x256xf32>
    %144 = arith.addf %143, %142 : vector<8x256xf32>
    %145 = arith.divf %143, %144 : vector<8x256xf32>
    %146 = vector.extract_strided_slice %145 {offsets = [0, 0], sizes = [8, 128], strides = [1, 1]} : vector<8x256xf32> to vector<8x128xf32>
    %147 = vector.extract_strided_slice %145 {offsets = [0, 128], sizes = [8, 128], strides = [1, 1]} : vector<8x256xf32> to vector<8x128xf32>
    %148 = vector.extract_strided_slice %139 {offsets = [0, 256], sizes = [8, 128], strides = [1, 1]} : vector<8x384xf32> to vector<8x128xf32>
    %149 = arith.mulf %146, %148 : vector<8x128xf32>
    %150 = vector.broadcast %3 : vector<1x128xf32> to vector<8x128xf32>
    %151 = arith.addf %150, %149 : vector<8x128xf32>
    %152 = math.tanh %151 : vector<8x128xf32>
    %153 = arith.subf %136, %152 : vector<8x128xf32>
    %154 = arith.mulf %147, %153 : vector<8x128xf32>
    %155 = arith.addf %152, %154 : vector<8x128xf32>
    %156 = tpu.concatenate %22, %41, %60, %79, %98, %117, %136, %155 in 0 : vector<8x128xf32>, vector<8x128xf32>, vector<8x128xf32>, vector<8x128xf32>, vector<8x128xf32>, vector<8x128xf32>, vector<8x128xf32>, vector<8x128xf32> -> vector<64x128xf32>
    %c0_21 = arith.constant 0 : index
    %c0_22 = arith.constant 0 : index
    %157 = vector.load %arg4[%c0_21, %c0_22] : memref<129x128xf32, #tpu.memory_space<vmem>>, vector<128x128xf32>
    %c128 = arith.constant 128 : index
    %c0_23 = arith.constant 0 : index
    %158 = vector.load %arg4[%c128, %c0_23] : memref<129x128xf32, #tpu.memory_space<vmem>>, vector<1x128xf32>
    %cst_24 = arith.constant dense<0.000000e+00> : vector<64x128xf32>
    %159 = tpu.matmul %156, %157, %cst_24 {dimension_numbers = #tpu.dot_dimension_numbers<[1], [0], [0], [1], [0, 0, 1, 1], [], []>} : vector<64x128xf32>, vector<128x128xf32>, vector<64x128xf32> -> vector<64x128xf32>
    %160 = vector.broadcast %158 : vector<1x128xf32> to vector<64x128xf32>
    %161 = arith.addf %159, %160 : vector<64x128xf32>
    %c0_25 = arith.constant 0 : index
    %c0_26 = arith.constant 0 : index
    %162 = vector.load %arg5[%c0_25, %c0_26] : memref<64x128xf32, #tpu.memory_space<vmem>>, vector<64x128xf32>
    tpu.vector_store %arg5[%c0_25, %c0_26], %161 {strides = array<i32>} : memref<64x128xf32, #tpu.memory_space<vmem>>, vector<64x128xf32>,
    return
  }
  func.func @transform_0(%arg0: i32) -> (i32, i32) {
    %c0_i32 = arith.constant 0 : i32
    %c0_i32_0 = arith.constant 0 : i32
    return %arg0, %c0_i32 : i32, i32
  }
  func.func @transform_1(%arg0: i32) -> (i32, i32) {
    %c0_i32 = arith.constant 0 : i32
    %c0_i32_0 = arith.constant 0 : i32
    %c0_i32_1 = arith.constant 0 : i32
    return %c0_i32, %c0_i32_0 : i32, i32
  }
  func.func @transform_2(%arg0: i32) -> (i32, i32) {
    %c0_i32 = arith.constant 0 : i32
    %c0_i32_0 = arith.constant 0 : i32
    %c0_i32_1 = arith.constant 0 : i32
    return %c0_i32, %c0_i32_0 : i32, i32
  }
  func.func @transform_3(%arg0: i32) -> (i32, i32) {
    %c0_i32 = arith.constant 0 : i32
    %c0_i32_0 = arith.constant 0 : i32
    %c0_i32_1 = arith.constant 0 : i32
    return %c0_i32, %c0_i32_0 : i32, i32
  }
  func.func @transform_4(%arg0: i32) -> (i32, i32) {
    %c0_i32 = arith.constant 0 : i32
    %c0_i32_0 = arith.constant 0 : i32
    return %arg0, %c0_i32 : i32, i32
  }
}

</mosaic_0001>

<bundles_post_ra>
// kernel: tpu_custom_call.1
= control target key start
LH: loop header
LB: loop body
LE: loop exit
PB: predicated region body
PF: predicated region fallthrough
CT: control target
= control target key end

     0   :  { %9 = vsyncpa [#allocation3], 0  ;;  %s3150_s0 = inlined_call_operand.hbm [shape: f32[8,128], index: 0, kind: input, shape index: {}]   ;;  %s3151_s1 = inlined_call_operand.hbm [shape: f32[128,384], index: 1, kind: input, shape index: {}]   ;;  %s3152_s2 = inlined_call_operand.hbm [shape: f32[2,384], index: 2, kind: input, shape index: {}]   ;;  %s3153_s3 = inlined_call_operand.hbm [shape: f32[129,128], index: 3, kind: input, shape index: {}]   ;;  %s3154_s4 = inlined_call_operand.hbm [shape: f32[64,128], index: 4, kind: output, shape index: {}]  }
   0x1   :  { %10 = vsyncpa [#allocation6], 0 }
   0x2   :  { %11 = vsyncpa [#allocation9], 0 }
   0x3   :  { %12 = vsyncpa [#allocation4], 0  ;;  %s2315_s15 = smov [#allocation5]  }
   0x4   :  { %s28_s16 = sshll.u32 %s2315_s15, 4  ;;  %s29_s16 = int_to_ptr.vmem [resolvable:$true] %s28_s16 }
   0x5   :  { %s2215_s17 = scalar_lea.vmem %s29_s16, 6144  ;;  %p2220_p1 = scmp.lt.s32.totalorder %s29_s16, %s29_s16 }
   0x6   :  { %p2216_p0 = scmp.ne.s32.totalorder %s29_s16, %s2215_s17  ;;  %p2221_p2 = scmp.lt.s32.totalorder %s2215_s17, %s2215_s17 }
   0x8   :  { %p2222_p3 = por %p2221_p2, %p2220_p1 }
   0xa   :  { %p2223_p4 = pnand %p2222_p3, %p2216_p0 }
   0xc   :  { %2226 = shalt.err (!%p2223_p4)
}
   0xd   :  { %s2316_s18 = smov 384   ;;  %s2317_s19 = smov 24  }
   0xe   :  { %34 = dma.hbm_to_vmem [thread:$0]  %s3151_s1, 6144, %s29_s16, [#allocation6], %s2316_s18, %s2316_s18, %s2317_s19  }
   0xf   :  { %s2318_s22 = smov [#allocation2]   ;;  %s2319_s24 = smov [#allocation7]  }
  0x10   :  { %s19_s23 = sshll.u32 %s2318_s22, 4  ;;  %s41_s25 = sshll.u32 %s2319_s24, 4  ;;  %s20_s23 = int_to_ptr.vmem [resolvable:$true] %s19_s23  ;;  %s42_s25 = int_to_ptr.vmem [resolvable:$true] %s41_s25 }
  0x11   :  { %s2235_s26 = scalar_lea.vmem %s20_s23, 128  ;;  %p2240_p6 = scmp.lt.s32.totalorder %s20_s23, %s20_s23 }
  0x12   :  { %p2236_p5 = scmp.ne.s32.totalorder %s20_s23, %s2235_s26  ;;  %p2241_p7 = scmp.lt.s32.totalorder %s2235_s26, %s2235_s26 }
  0x14   :  { %p2242_p8 = por %p2241_p7, %p2240_p6 }
  0x16   :  { %p2243_p9 = pnand %p2242_p8, %p2236_p5 }
  0x18   :  { %2246 = shalt.err (!%p2243_p9)
}
  0x19   :  { %22 = dma.hbm_to_vmem [thread:$0]  %s3150_s0, 128, %s20_s23, [#allocation3]  }
  0x1a   :  { %s2255_s29 = scalar_lea.vmem %s42_s25, 96  ;;  %p2260_p11 = scmp.lt.s32.totalorder %s42_s25, %s42_s25 }
  0x1b   :  { %p2256_p10 = scmp.ne.s32.totalorder %s42_s25, %s2255_s29  ;;  %p2261_p12 = scmp.lt.s32.totalorder %s2255_s29, %s2255_s29 }
  0x1d   :  { %p2262_p13 = por %p2261_p12, %p2260_p11 }
  0x1f   :  { %p2263_p0 = pnand %p2262_p13, %p2256_p10 }
  0x21   :  { %2266 = shalt.err (!%p2263_p0)
}
  0x22   :  { %44 = dma.hbm_to_vmem [thread:$0]  %s3152_s2, 96, %s42_s25, [#allocation6]  }
  0x23   :  { %s2320_s5 = smov [#allocation8]  }
  0x24   :  { %s50_s6 = sshll.u32 %s2320_s5, 4  ;;  %s51_s6 = int_to_ptr.vmem [resolvable:$true] %s50_s6 }
  0x25   :  { %s2275_s7 = scalar_lea.vmem %s51_s6, 2176  ;;  %p2280_p2 = scmp.lt.s32.totalorder %s51_s6, %s51_s6 }
  0x26   :  { %p2276_p1 = scmp.ne.s32.totalorder %s51_s6, %s2275_s7  ;;  %p2281_p3 = scmp.lt.s32.totalorder %s2275_s7, %s2275_s7 }
  0x28   :  { %p2282_p4 = por %p2281_p3, %p2280_p2 }
  0x2a   :  { %p2283_p5 = pnand %p2282_p4, %p2276_p1 }
  0x2c   :  { %2286 = shalt.err (!%p2283_p5)
}
  0x2d   :  { %s2321_s0 = smov 128   ;;  %s2322_s8 = smov 8  }
  0x2e   :  { %56 = dma.hbm_to_vmem [thread:$0]  %s3153_s3, 2176, %s51_s6, [#allocation9], %s2321_s0, %s2321_s0, %s2322_s8  }
  0x2f   :  { %2307 = dma.done.wait [#allocation3], 128  }
  0x30   :  { %2308 = vsyncadd [#allocation3], 4294967168 }
  0x31   :  { %2309 = dma.done.wait [#allocation6], 6240  }
  0x32   :  { %2310 = vsyncadd [#allocation6], 4294961056 }
  0x33   :  { %2311 = dma.done.wait [#allocation9], 2176  }
  0x34   :  { %2312 = vsyncadd [#allocation9], 4294965120  ;;  %v3155_v0 = vmov 0.0   ;;  %v2368_v1 = vld [vmem:[#allocation5 + $0x170] sm:$0xff]  ;;  %v2370_v2 = vld [vmem:[#allocation5 + $0x168] sm:$0xff]  ;;  %vm2324_vm0 = vmmov 0   ;;  %v121_v50 = vlaneseq }
  0x35   :  { %200 = vmatprep.mubr.f32.mxu1 %v3155_v0  ;;  %363 = vmatprep.mubr.f32.mxu0 %v3155_v0  ;;  %3173 = vst [vmem:[#allocation15_spill] sm:$0xff] %v2368_v1  ;;  %v2372_v3 = vld [vmem:[#allocation5 + $0x158] sm:$0xff]  ;;  %v2375_v4 = vld [vmem:[#allocation5 + $0x150] sm:$0xff]  ;;  %v2379_v5 = vld [vmem:[#allocation5 + $0x140] sm:$0xff]  ;;  %s2325_s2 = smov [#allocation10]  }
  0x36   :  { %136 = vmatprep.subr.mxu1 %v2368_v1  ;;  %299 = vmatprep.subr.mxu0 %v2368_v1  ;;  %v2383_v6 = vld [vmem:[#allocation5 + $0x138] sm:$0xff]  ;;  %v2387_v7 = vld [vmem:[#allocation5 + $0x128] sm:$0xff]  ;;  %v2391_v8 = vld [vmem:[#allocation5 + $0x120] sm:$0xff]  ;;  %v122_v51 = vshrl.u32 %v121_v50, 7  ;;  %s1551_s3 = sshll.u32 %s2325_s2, 4  ;;  %s1552_s3 = int_to_ptr.vmem [resolvable:$true] %s1551_s3 }
  0x37   :  { %137 = vmatpush1.msra.mxu1 %v2370_v2  ;;  %300 = vmatpush1.msra.mxu0 %v2370_v2  ;;  %v2395_v9 = vld [vmem:[#allocation5 + $0x110] sm:$0xff]  ;;  %v2399_v10 = vld [vmem:[#allocation5 + $0x108] sm:$0xff]  ;;  %v2403_v11 = vld [vmem:[#allocation5 + $0xf8] sm:$0xff]  ;;  %s2287_s11 = scalar_lea.vmem %s1552_s3, 1024  ;;  %p2292_p7 = scmp.lt.s32.totalorder %s1552_s3, %s1552_s3 }
  0x38   :  { %138 = vmatprep.subr.mxu1 %v2372_v3  ;;  %301 = vmatprep.subr.mxu0 %v2372_v3  ;;  %v2407_v12 = vld [vmem:[#allocation5 + $0xf0] sm:$0xff]  ;;  %v2411_v13 = vld [vmem:[#allocation5 + $0xe0] sm:$0xff]  ;;  %v2415_v14 = vld [vmem:[#allocation5 + $0xd8] sm:$0xff]  ;;  %v123_v52 = vsub.s32 0, %v122_v51  ;;  %v127_v58 = vsub.s32 1, %v122_v51  ;;  %v131_v50 = vsub.s32 2, %v122_v51  ;;  %p2288_p6 = scmp.ne.s32.totalorder %s1552_s3, %s2287_s11  ;;  %p2293_p8 = scmp.lt.s32.totalorder %s2287_s11, %s2287_s11 }
  0x39   :  { %139 = vmatpush1.msra.mxu1 %v2375_v4  ;;  %302 = vmatpush1.msra.mxu0 %v2375_v4  ;;  %v2419_v15 = vld [vmem:[#allocation5 + $0xc8] sm:$0xff]  ;;  %v2423_v16 = vld [vmem:[#allocation5 + $0xc0] sm:$0xff]  ;;  %v2427_v17 = vld [vmem:[#allocation5 + $0xb0] sm:$0xff] }
  0x3a   :  { %140 = vmatprep.subr.mxu1 %v2379_v5  ;;  %303 = vmatprep.subr.mxu0 %v2379_v5  ;;  %v2431_v18 = vld [vmem:[#allocation5 + $0xa8] sm:$0xff]  ;;  %v2435_v19 = vld [vmem:[#allocation5 + $0x98] sm:$0xff]  ;;  %v2439_v20 = vld [vmem:[#allocation5 + $0x90] sm:$0xff]  ;;  %p2294_p9 = por %p2293_p8, %p2292_p7 }
  0x3b   :  { %141 = vmatpush1.msra.mxu1 %v2383_v6  ;;  %304 = vmatpush1.msra.mxu0 %v2383_v6  ;;  %v2443_v21 = vld [vmem:[#allocation5 + $0x80] sm:$0xff]  ;;  %v2447_v22 = vld [vmem:[#allocation5 + $0x78] sm:$0xff]  ;;  %v2451_v23 = vld [vmem:[#allocation5 + $0x68] sm:$0xff] }
  0x3c   :  { %142 = vmatprep.subr.mxu1 %v2387_v7  ;;  %305 = vmatprep.subr.mxu0 %v2387_v7  ;;  %v2455_v24 = vld [vmem:[#allocation5 + $0x60] sm:$0xff]  ;;  %v2459_v25 = vld [vmem:[#allocation5 + $0x50] sm:$0xff]  ;;  %v2463_v26 = vld [vmem:[#allocation5 + $0x48] sm:$0xff]  ;;  %p2295_p10 = pnand %p2294_p9, %p2288_p6 }
  0x3d   :  { %143 = vmatpush1.msra.mxu1 %v2391_v8  ;;  %306 = vmatpush1.msra.mxu0 %v2391_v8  ;;  %v2467_v27 = vld [vmem:[#allocation5 + $0x38] sm:$0xff]  ;;  %v2471_v28 = vld [vmem:[#allocation5 + $0x30] sm:$0xff]  ;;  %v2475_v29 = vld [vmem:[#allocation5 + $0x20] sm:$0xff] }
  0x3e   :  { %144 = vmatprep.subr.mxu1 %v2395_v9  ;;  %307 = vmatprep.subr.mxu0 %v2395_v9  ;;  %v2479_v30 = vld [vmem:[#allocation5 + $0x18] sm:$0xff]  ;;  %v2483_v31 = vld [vmem:[#allocation5 + $0x8] sm:$0xff]  ;;  %v2487_v32 = vld [vmem:[#allocation5] sm:$0xff] }
  0x3f   :  { %145 = vmatpush1.msra.mxu1 %v2399_v10  ;;  %308 = vmatpush1.msra.mxu0 %v2399_v10  ;;  %3174 = vst [vmem:[#allocation16_spill] sm:$0xff] %v2479_v30  ;;  %3175 = vst [vmem:[#allocation17_spill] sm:$0xff] %v2483_v31  ;;  %v2491_v33 = vld [vmem:[#allocation2] sm:$0xff]  ;;  %v2502_v35 = vld [vmem:[#allocation5 + $0x160] sm:$0xff] }
  0x40   :  { %146 = vmatprep.subr.mxu1 %v2403_v11  ;;  %309 = vmatprep.subr.mxu0 %v2403_v11  ;;  %3176 = vst [vmem:[#allocation18_spill] sm:$0xff] %v2487_v32  ;;  %v2495_v34 = vld [vmem:[#allocation5 + $0x178] sm:$0xff]  ;;  %v2508_v36 = vld [vmem:[#allocation5 + $0x148] sm:$0xff]  ;;  %v2513_v37 = vld [vmem:[#allocation5 + $0x130] sm:$0xff] }
  0x41   :  { %147 = vmatpush1.msra.mxu1 %v2407_v12  ;;  %310 = vmatpush1.msra.mxu0 %v2407_v12  ;;  %v2517_v38 = vld [vmem:[#allocation5 + $0x118] sm:$0xff]  ;;  %v2521_v39 = vld [vmem:[#allocation5 + $0x100] sm:$0xff]  ;;  %v2525_v40 = vld [vmem:[#allocation5 + $0xe8] sm:$0xff] }
  0x42   :  { %148 = vmatprep.subr.mxu1 %v2411_v13  ;;  %311 = vmatprep.subr.mxu0 %v2411_v13  ;;  %v2529_v41 = vld [vmem:[#allocation5 + $0xd0] sm:$0xff]  ;;  %v2533_v42 = vld [vmem:[#allocation5 + $0xb8] sm:$0xff]  ;;  %v2537_v43 = vld [vmem:[#allocation5 + $0xa0] sm:$0xff] }
  0x43   :  { %149 = vmatpush1.msra.mxu1 %v2415_v14  ;;  %312 = vmatpush1.msra.mxu0 %v2415_v14  ;;  %v2541_v44 = vld [vmem:[#allocation5 + $0x88] sm:$0xff]  ;;  %v2545_v45 = vld [vmem:[#allocation5 + $0x70] sm:$0xff]  ;;  %v2549_v46 = vld [vmem:[#allocation5 + $0x58] sm:$0xff] }
  0x44   :  { %150 = vmatprep.subr.mxu1 %v2419_v15  ;;  %313 = vmatprep.subr.mxu0 %v2419_v15  ;;  %v2553_v47 = vld [vmem:[#allocation5 + $0x40] sm:$0xff]  ;;  %v2557_v48 = vld [vmem:[#allocation5 + $0x28] sm:$0xff]  ;;  %v2561_v49 = vld [vmem:[#allocation5 + $0x10] sm:$0xff] }
  0x45   :  { %151 = vmatpush1.msra.mxu1 %v2423_v16  ;;  %314 = vmatpush1.msra.mxu0 %v2423_v16  ;;  %3177 = vst [vmem:[#allocation19_spill] sm:$0xff] %v2557_v48  ;;  %3178 = vst [vmem:[#allocation20_spill] sm:$0xff] %v2561_v49  ;;  %v118_v53 = vld [vmem:[#allocation7] ss:$2 sm:$0x7] }
  0x46   :  { %152 = vmatprep.subr.mxu1 %v2427_v17  ;;  %315 = vmatprep.subr.mxu0 %v2427_v17  ;;  %v2602_v54 = vrot.slane %v118_v53, %v123_v52  ;;  %v2605_v59 = vrot.slane %v118_v53, %v127_v58 }
  0x47   :  { %153 = vmatpush1.msra.mxu1 %v2431_v18  ;;  %316 = vmatpush1.msra.mxu0 %v2431_v18 }
  0x48   :  { %154 = vmatprep.subr.mxu1 %v2435_v19  ;;  %317 = vmatprep.subr.mxu0 %v2435_v19  ;;  %3179 = vst [vmem:[#allocation21_spill] sm:$0xff] %v2602_v54 }
  0x49   :  { %155 = vmatpush1.msra.mxu1 %v2439_v20  ;;  %318 = vmatpush1.msra.mxu0 %v2439_v20 }
  0x4a   :  { %156 = vmatprep.subr.mxu1 %v2443_v21  ;;  %319 = vmatprep.subr.mxu0 %v2443_v21 }
  0x4b   :  { %157 = vmatpush1.msra.mxu1 %v2447_v22  ;;  %320 = vmatpush1.msra.mxu0 %v2447_v22 }
  0x4c   :  { %158 = vmatprep.subr.mxu1 %v2451_v23  ;;  %321 = vmatprep.subr.mxu0 %v2451_v23 }
  0x4d   :  { %159 = vmatpush1.msra.mxu1 %v2455_v24  ;;  %322 = vmatpush1.msra.mxu0 %v2455_v24 }
  0x4e   :  { %160 = vmatprep.subr.mxu1 %v2459_v25  ;;  %323 = vmatprep.subr.mxu0 %v2459_v25 }
  0x4f   :  { %161 = vmatpush1.msra.mxu1 %v2463_v26  ;;  %324 = vmatpush1.msra.mxu0 %v2463_v26 }
  0x50   :  { %162 = vmatprep.subr.mxu1 %v2467_v27  ;;  %325 = vmatprep.subr.mxu0 %v2467_v27 }
  0x51   :  { %163 = vmatpush1.msra.mxu1 %v2471_v28  ;;  %326 = vmatpush1.msra.mxu0 %v2471_v28 }
  0x52   :  { %164 = vmatprep.subr.mxu1 %v2475_v29  ;;  %327 = vmatprep.subr.mxu0 %v2475_v29 }
  0x53   :  { %165 = vmatpush1.msra.mxu1 %v2479_v30  ;;  %328 = vmatpush1.msra.mxu0 %v2479_v30 }
  0x54   :  { %166 = vmatprep.subr.mxu1 %v2483_v31  ;;  %329 = vmatprep.subr.mxu0 %v2483_v31 }
  0x55   :  { %167 = vmatpush1.msra.mxu1 %v2487_v32  ;;  %330 = vmatpush1.msra.mxu0 %v2487_v32 }
  0x56   :  { %201 = vmatmul.mubr.f32.vlgmr.msra.gmra.mxu1 %v2491_v33  ;;  %1743 = vmatprep.subr.mxu1 %v3155_v0 }
  0x57   :  { %1744 = vmatpush3.msra.mxu1 %v2495_v34  ;;  %1775 = vmatprep.mubr.msk.f32.mxu1 %vm2324_vm0, %v3155_v0 }
  0x58   :  { %1745 = vmatprep.subr.mxu1 %v3155_v0  ;;  %458 = vmatprep.subr.mxu0 %v2368_v1  ;;  %v2608_v1 = vrot.slane %v118_v53, %v131_v50 }
  0x59   :  { %1746 = vmatpush3.msra.mxu1 %v2502_v35 }
  0x5a   :  { %1747 = vmatprep.subr.mxu1 %v3155_v0 }
  0x5b   :  { %1748 = vmatpush3.msra.mxu1 %v2508_v36 }
  0x5c   :  { %1749 = vmatprep.subr.mxu1 %v3155_v0 }
  0x5d   :  { %1750 = vmatpush3.msra.mxu1 %v2513_v37 }
  0x5e   :  { %1751 = vmatprep.subr.mxu1 %v3155_v0 }
  0x5f   :  { %1752 = vmatpush3.msra.mxu1 %v2517_v38 }
  0x60   :  { %1753 = vmatprep.subr.mxu1 %v3155_v0 }
  0x61   :  { %1754 = vmatpush3.msra.mxu1 %v2521_v39 }
  0x62   :  { %1755 = vmatprep.subr.mxu1 %v3155_v0 }
  0x63   :  { %1756 = vmatpush3.msra.mxu1 %v2525_v40 }
  0x64   :  { %1757 = vmatprep.subr.mxu1 %v3155_v0 }
  0x65   :  { %1758 = vmatpush3.msra.mxu1 %v2529_v41 }
  0x66   :  { %1759 = vmatprep.subr.mxu1 %v3155_v0 }
  0x67   :  { %1760 = vmatpush3.msra.mxu1 %v2533_v42 }
  0x68   :  { %1761 = vmatprep.subr.mxu1 %v3155_v0 }
  0x69   :  { %1762 = vmatpush3.msra.mxu1 %v2537_v43 }
  0x6a   :  { %1763 = vmatprep.subr.mxu1 %v3155_v0 }
  0x6b   :  { %1764 = vmatpush3.msra.mxu1 %v2541_v44 }
  0x6c   :  { %1765 = vmatprep.subr.mxu1 %v3155_v0 }
  0x6d   :  { %1766 = vmatpush3.msra.mxu1 %v2545_v45 }
  0x6e   :  { %1767 = vmatprep.subr.mxu1 %v3155_v0 }
  0x6f   :  { %1768 = vmatpush3.msra.mxu1 %v2549_v46 }
  0x70   :  { %1769 = vmatprep.subr.mxu1 %v3155_v0 }
  0x71   :  { %1770 = vmatpush3.msra.mxu1 %v2553_v47 }
  0x72   :  { %1771 = vmatprep.subr.mxu1 %v3155_v0 }
  0x73   :  { %1772 = vmatpush3.msra.mxu1 %v2557_v48 }
  0x74   :  { %1773 = vmatprep.subr.mxu1 %v3155_v0 }
  0x75   :  { %1774 = vmatpush3.msra.mxu1 %v2561_v49 }
  0x76   :  { %1776 = vmatmul.mubr.f32.vlgmr.msra.gmra.mxu1 %v2491_v33  ;;  %1778 = vmatprep.subr.mxu1 %v3155_v0 }
  0x77   :  { %1779 = vmatpush3.msra.mxu1 %v2495_v34  ;;  %1810 = vmatprep.mubr.msk.f32.mxu1 %vm2324_vm0, %v3155_v0 }
  0x78   :  { %1780 = vmatprep.subr.mxu1 %v3155_v0 }
  0x79   :  { %1781 = vmatpush3.msra.mxu1 %v2502_v35 }
  0x7a   :  { %1782 = vmatprep.subr.mxu1 %v3155_v0 }
  0x7b   :  { %1783 = vmatpush3.msra.mxu1 %v2508_v36 }
  0x7c   :  { %1784 = vmatprep.subr.mxu1 %v3155_v0 }
  0x7d   :  { %1785 = vmatpush3.msra.mxu1 %v2513_v37 }
  0x7e   :  { %1786 = vmatprep.subr.mxu1 %v3155_v0 }
  0x7f   :  { %1787 = vmatpush3.msra.mxu1 %v2517_v38 }
  0x80   :  { %1788 = vmatprep.subr.mxu1 %v3155_v0 }
  0x81   :  { %1789 = vmatpush3.msra.mxu1 %v2521_v39 }
  0x82   :  { %1790 = vmatprep.subr.mxu1 %v3155_v0 }
  0x83   :  { %1791 = vmatpush3.msra.mxu1 %v2525_v40 }
  0x84   :  { %1792 = vmatprep.subr.mxu1 %v3155_v0 }
  0x85   :  { %1793 = vmatpush3.msra.mxu1 %v2529_v41 }
  0x86   :  { %1794 = vmatprep.subr.mxu1 %v3155_v0 }
  0x87   :  { %1795 = vmatpush3.msra.mxu1 %v2533_v42 }
  0x88   :  { %1796 = vmatprep.subr.mxu1 %v3155_v0 }
  0x89   :  { %1797 = vmatpush3.msra.mxu1 %v2537_v43 }
  0x8a   :  { %1798 = vmatprep.subr.mxu1 %v3155_v0 }
  0x8b   :  { %1799 = vmatpush3.msra.mxu1 %v2541_v44 }
  0x8c   :  { %1800 = vmatprep.subr.mxu1 %v3155_v0 }
  0x8d   :  { %1801 = vmatpush3.msra.mxu1 %v2545_v45 }
  0x8e   :  { %1802 = vmatprep.subr.mxu1 %v3155_v0 }
  0x8f   :  { %1803 = vmatpush3.msra.mxu1 %v2549_v46 }
  0x90   :  { %1804 = vmatprep.subr.mxu1 %v3155_v0 }
  0x91   :  { %1805 = vmatpush3.msra.mxu1 %v2553_v47 }
  0x92   :  { %1806 = vmatprep.subr.mxu1 %v3155_v0 }
  0x93   :  { %1807 = vmatpush3.msra.mxu1 %v2557_v48 }
  0x94   :  { %1808 = vmatprep.subr.mxu1 %v3155_v0 }
  0x95   :  { %1809 = vmatpush3.msra.mxu1 %v2561_v49 }
  0x96   :  { %1813 = vmatprep.subr.mxu1 %v3155_v0 }
 0x116   :  { %v202_v55 = vpop.f32.mrf.mxu1 }
 0x117   :  { %v203_v56 = vadd.f32 %v202_v55, %v2602_v54  ;;  %v2611_v54 = vld [vmem:[#allocation7 + $0x1] ss:$0 sm:$0xff] }
 0x118   :  { %v204_v60 = vpop.f32.mrf.mxu1 }
 0x119   :  { %v1565_v57 = vmul.f32 -1.442695, %v203_v56  ;;  %v205_v61 = vadd.f32 %v204_v60, %v2605_v59 }
 0x11b   :  { %2078 = vpow2.f32 %v1565_v57  ;;  %v1566_v62 = vmul.f32 -1.442695, %v205_v61 }
 0x11d   :  { %2080 = vpow2.f32 %v1566_v62 }
 0x128   :  { %v2079_v63 = vpop.eup %2078 }
 0x129   :  { %v283_v0 = vadd.f32 1.0, %v2079_v63  ;;  %v3184_v63 = vld [vmem:[#allocation15_spill] sm:$0xff] }
 0x12a   :  { %v2081_v49 = vpop.eup %2080 }
 0x12b   :  { %2082 = vrcp.f32 %v283_v0  ;;  %v284_v32 = vadd.f32 1.0, %v2081_v49  ;;  %v3181_v49 = vmov 0.0  }
 0x136   :  { %v273_v52 = vpop.f32.mrf.mxu1 }
 0x137   :  { %v274_v55 = vadd.f32 %v273_v52, %v2608_v1 }
 0x138   :  { %v2083_v56 = vpop.eup %2082  ;;  %v1777_v57 = vpop.f32.mrf.mxu1 }
 0x139   :  { %v289_v58 = vmul.f32 %v2083_v56, %v274_v55  ;;  %v3185_v55 = vld [vmem:[#allocation21_spill] sm:$0xff] }
 0x13b   :  { %v294_v60 = vadd.f32 %v2611_v54, %v289_v58 }
 0x13d   :  { %2084 = vtanh.f32 %v294_v60 }
 0x13e   :  { %2086 = vrcp.f32 %v284_v32  ;;  %v3182_v32 = vld [vmem:[#allocation18_spill] sm:$0xff] }
 0x14a   :  { %v2085_v61 = vpop.eup %2084 }
 0x14b   :  { %v296_v0 = vsub.f32 %v2491_v33, %v2085_v61  ;;  %v2087_v51 = vpop.eup %2086  ;;  %v3183_v33 = vld [vmem:[#allocation20_spill] sm:$0xff] }
 0x14d   :  { %v297_v53 = vmul.f32 %v2087_v51, %v296_v0 }
 0x14f   :  { %v2615_v62 = vadd.f32 %v2085_v61, %v297_v53 }
 0x151   :  { %3180 = vst [vmem:[#allocation22_spill] sm:$0xff] %v2615_v62  ;;  %364 = vmatmul.mubr.f32.vlgmr.msra.gmra.mxu0 %v2615_v62  ;;  %1811 = vmatmul.mubr.f32.vlgmr.msra.gmra.mxu1 %v2615_v62 }
 0x152   :  { %459 = vmatpush1.msra.mxu0 %v2370_v2  ;;  %1814 = vmatpush3.msra.mxu1 %v2495_v34 }
 0x153   :  { %460 = vmatprep.subr.mxu0 %v2372_v3  ;;  %1815 = vmatprep.subr.mxu1 %v3181_v49 }
 0x154   :  { %461 = vmatpush1.msra.mxu0 %v2375_v4  ;;  %1816 = vmatpush3.msra.mxu1 %v2502_v35 }
 0x155   :  { %462 = vmatprep.subr.mxu0 %v2379_v5  ;;  %1817 = vmatprep.subr.mxu1 %v3181_v49 }
 0x156   :  { %463 = vmatpush1.msra.mxu0 %v2383_v6  ;;  %1818 = vmatpush3.msra.mxu1 %v2508_v36 }
 0x157   :  { %464 = vmatprep.subr.mxu0 %v2387_v7  ;;  %1819 = vmatprep.subr.mxu1 %v3181_v49 }
 0x158   :  { %465 = vmatpush1.msra.mxu0 %v2391_v8  ;;  %1820 = vmatpush3.msra.mxu1 %v2513_v37 }
 0x159   :  { %466 = vmatprep.subr.mxu0 %v2395_v9  ;;  %1821 = vmatprep.subr.mxu1 %v3181_v49 }
 0x15a   :  { %467 = vmatpush1.msra.mxu0 %v2399_v10  ;;  %1822 = vmatpush3.msra.mxu1 %v2517_v38 }
 0x15b   :  { %468 = vmatprep.subr.mxu0 %v2403_v11  ;;  %1823 = vmatprep.subr.mxu1 %v3181_v49 }
 0x15c   :  { %469 = vmatpush1.msra.mxu0 %v2407_v12  ;;  %1824 = vmatpush3.msra.mxu1 %v2521_v39 }
 0x15d   :  { %470 = vmatprep.subr.mxu0 %v2411_v13  ;;  %1825 = vmatprep.subr.mxu1 %v3181_v49 }
 0x15e   :  { %471 = vmatpush1.msra.mxu0 %v2415_v14  ;;  %1826 = vmatpush3.msra.mxu1 %v2525_v40 }
 0x15f   :  { %472 = vmatprep.subr.mxu0 %v2419_v15  ;;  %1827 = vmatprep.subr.mxu1 %v3181_v49 }
 0x160   :  { %473 = vmatpush1.msra.mxu0 %v2423_v16  ;;  %1828 = vmatpush3.msra.mxu1 %v2529_v41 }
 0x161   :  { %474 = vmatprep.subr.mxu0 %v2427_v17  ;;  %1829 = vmatprep.subr.mxu1 %v3181_v49 }
 0x162   :  { %475 = vmatpush1.msra.mxu0 %v2431_v18  ;;  %1830 = vmatpush3.msra.mxu1 %v2533_v42 }
 0x163   :  { %476 = vmatprep.subr.mxu0 %v2435_v19  ;;  %1831 = vmatprep.subr.mxu1 %v3181_v49 }
 0x164   :  { %477 = vmatpush1.msra.mxu0 %v2439_v20  ;;  %1832 = vmatpush3.msra.mxu1 %v2537_v43 }
 0x165   :  { %478 = vmatprep.subr.mxu0 %v2443_v21  ;;  %1833 = vmatprep.subr.mxu1 %v3181_v49 }
 0x166   :  { %479 = vmatpush1.msra.mxu0 %v2447_v22  ;;  %1834 = vmatpush3.msra.mxu1 %v2541_v44 }
 0x167   :  { %480 = vmatprep.subr.mxu0 %v2451_v23  ;;  %1835 = vmatprep.subr.mxu1 %v3181_v49 }
 0x168   :  { %481 = vmatpush1.msra.mxu0 %v2455_v24  ;;  %1836 = vmatpush3.msra.mxu1 %v2545_v45 }
 0x169   :  { %482 = vmatprep.subr.mxu0 %v2459_v25  ;;  %1837 = vmatprep.subr.mxu1 %v3181_v49 }
 0x16a   :  { %483 = vmatpush1.msra.mxu0 %v2463_v26  ;;  %1838 = vmatpush3.msra.mxu1 %v2549_v46 }
 0x16b   :  { %484 = vmatprep.subr.mxu0 %v2467_v27  ;;  %1839 = vmatprep.subr.mxu1 %v3181_v49 }
 0x16c   :  { %485 = vmatpush1.msra.mxu0 %v2471_v28  ;;  %1840 = vmatpush3.msra.mxu1 %v2553_v47 }
 0x16d   :  { %486 = vmatprep.subr.mxu0 %v2475_v29  ;;  %1841 = vmatprep.subr.mxu1 %v3181_v49 }
 0x16e   :  { %487 = vmatpush1.msra.mxu0 %v2479_v30  ;;  %1842 = vmatpush3.msra.mxu1 %v2557_v48 }
 0x16f   :  { %488 = vmatprep.subr.mxu0 %v2483_v31  ;;  %1843 = vmatprep.subr.mxu1 %v3181_v49 }
 0x170   :  { %489 = vmatpush1.msra.mxu0 %v3182_v32  ;;  %522 = vmatprep.mubr.f32.mxu0 %v3181_v49 }
 0x171   :  { %1844 = vmatpush3.msra.mxu1 %v3183_v33  ;;  %1845 = vmatprep.mubr.msk.f32.mxu1 %vm2324_vm0, %v3181_v49 }
 0x172   :  { %617 = vmatprep.subr.mxu0 %v3184_v63  ;;  %1848 = vmatprep.subr.mxu1 %v3181_v49 }
 0x211   :  { %v365_v50 = vpop.f32.mrf.mxu0  ;;  %v436_v52 = vpop.f32.mrf.mxu1 }
 0x212   :  { %v366_v56 = vadd.f32 %v365_v50, %v3185_v55  ;;  %v437_v63 = vadd.f32 %v436_v52, %v2608_v1 }
 0x213   :  { %v1812_v57 = vpop.f32.mrf.mxu1  ;;  %v367_v60 = vpop.f32.mrf.mxu0 }
 0x214   :  { %v1568_v58 = vmul.f32 -1.442695, %v366_v56  ;;  %v368_v61 = vadd.f32 %v367_v60, %v2605_v59 }
 0x216   :  { %2088 = vpow2.f32 %v1568_v58  ;;  %v1569_v0 = vmul.f32 -1.442695, %v368_v61 }
 0x218   :  { %2090 = vpow2.f32 %v1569_v0 }
 0x223   :  { %v2089_v51 = vpop.eup %2088 }
 0x224   :  { %v446_v53 = vadd.f32 1.0, %v2089_v51 }
 0x225   :  { %v2091_v33 = vpop.eup %2090 }
 0x226   :  { %2092 = vrcp.f32 %v446_v53  ;;  %v447_v30 = vadd.f32 1.0, %v2091_v33  ;;  %v3191_v33 = vld [vmem:[#allocation20_spill] sm:$0xff] }
 0x233   :  { %v2093_v32 = vpop.eup %2092 }
 0x234   :  { %v452_v31 = vmul.f32 %v2093_v32, %v437_v63  ;;  %v3190_v32 = vld [vmem:[#allocation18_spill] sm:$0xff]  ;;  %v3192_v63 = vld [vmem:[#allocation15_spill] sm:$0xff] }
 0x236   :  { %v453_v48 = vadd.f32 %v2611_v54, %v452_v31  ;;  %v3188_v31 = vld [vmem:[#allocation19_spill] sm:$0xff] }
 0x238   :  { %2094 = vtanh.f32 %v453_v48  ;;  %v3189_v48 = vld [vmem:[#allocation17_spill] sm:$0xff] }
 0x239   :  { %2096 = vrcp.f32 %v447_v30  ;;  %v3187_v30 = vld [vmem:[#allocation16_spill] sm:$0xff] }
 0x245   :  { %v2095_v50 = vpop.eup %2094 }
 0x246   :  { %v455_v56 = vsub.f32 %v2615_v62, %v2095_v50  ;;  %v2097_v57 = vpop.eup %2096 }
 0x248   :  { %v456_v58 = vmul.f32 %v2097_v57, %v455_v56 }
 0x24a   :  { %v2691_v60 = vadd.f32 %v2095_v50, %v456_v58 }
 0x24c   :  { %3186 = vst [vmem:[#allocation21_spill] sm:$0xff] %v2691_v60  ;;  %523 = vmatmul.mubr.f32.vlgmr.msra.gmra.mxu0 %v2691_v60  ;;  %1846 = vmatmul.mubr.f32.vlgmr.msra.gmra.mxu1 %v2691_v60 }
 0x24d   :  { %618 = vmatpush1.msra.mxu0 %v2370_v2  ;;  %1849 = vmatpush3.msra.mxu1 %v2495_v34 }
 0x24e   :  { %619 = vmatprep.subr.mxu0 %v2372_v3  ;;  %1850 = vmatprep.subr.mxu1 %v3181_v49 }
 0x24f   :  { %620 = vmatpush1.msra.mxu0 %v2375_v4  ;;  %1851 = vmatpush3.msra.mxu1 %v2502_v35 }
 0x250   :  { %621 = vmatprep.subr.mxu0 %v2379_v5  ;;  %1852 = vmatprep.subr.mxu1 %v3181_v49 }
 0x251   :  { %622 = vmatpush1.msra.mxu0 %v2383_v6  ;;  %1853 = vmatpush3.msra.mxu1 %v2508_v36 }
 0x252   :  { %623 = vmatprep.subr.mxu0 %v2387_v7  ;;  %1854 = vmatprep.subr.mxu1 %v3181_v49 }
 0x253   :  { %624 = vmatpush1.msra.mxu0 %v2391_v8  ;;  %1855 = vmatpush3.msra.mxu1 %v2513_v37 }
 0x254   :  { %625 = vmatprep.subr.mxu0 %v2395_v9  ;;  %1856 = vmatprep.subr.mxu1 %v3181_v49 }
 0x255   :  { %626 = vmatpush1.msra.mxu0 %v2399_v10  ;;  %1857 = vmatpush3.msra.mxu1 %v2517_v38 }
 0x256   :  { %627 = vmatprep.subr.mxu0 %v2403_v11  ;;  %1858 = vmatprep.subr.mxu1 %v3181_v49 }
 0x257   :  { %628 = vmatpush1.msra.mxu0 %v2407_v12  ;;  %1859 = vmatpush3.msra.mxu1 %v2521_v39 }
 0x258   :  { %629 = vmatprep.subr.mxu0 %v2411_v13  ;;  %1860 = vmatprep.subr.mxu1 %v3181_v49 }
 0x259   :  { %630 = vmatpush1.msra.mxu0 %v2415_v14  ;;  %1861 = vmatpush3.msra.mxu1 %v2525_v40 }
 0x25a   :  { %631 = vmatprep.subr.mxu0 %v2419_v15  ;;  %1862 = vmatprep.subr.mxu1 %v3181_v49 }
 0x25b   :  { %632 = vmatpush1.msra.mxu0 %v2423_v16  ;;  %1863 = vmatpush3.msra.mxu1 %v2529_v41 }
 0x25c   :  { %633 = vmatprep.subr.mxu0 %v2427_v17  ;;  %1864 = vmatprep.subr.mxu1 %v3181_v49 }
 0x25d   :  { %634 = vmatpush1.msra.mxu0 %v2431_v18  ;;  %1865 = vmatpush3.msra.mxu1 %v2533_v42 }
 0x25e   :  { %635 = vmatprep.subr.mxu0 %v2435_v19  ;;  %1866 = vmatprep.subr.mxu1 %v3181_v49 }
 0x25f   :  { %636 = vmatpush1.msra.mxu0 %v2439_v20  ;;  %1867 = vmatpush3.msra.mxu1 %v2537_v43 }
 0x260   :  { %637 = vmatprep.subr.mxu0 %v2443_v21  ;;  %1868 = vmatprep.subr.mxu1 %v3181_v49 }
 0x261   :  { %638 = vmatpush1.msra.mxu0 %v2447_v22  ;;  %1869 = vmatpush3.msra.mxu1 %v2541_v44 }
 0x262   :  { %639 = vmatprep.subr.mxu0 %v2451_v23  ;;  %1870 = vmatprep.subr.mxu1 %v3181_v49 }
 0x263   :  { %640 = vmatpush1.msra.mxu0 %v2455_v24  ;;  %1871 = vmatpush3.msra.mxu1 %v2545_v45 }
 0x264   :  { %641 = vmatprep.subr.mxu0 %v2459_v25  ;;  %1872 = vmatprep.subr.mxu1 %v3181_v49 }
 0x265   :  { %642 = vmatpush1.msra.mxu0 %v2463_v26  ;;  %1873 = vmatpush3.msra.mxu1 %v2549_v46 }
 0x266   :  { %643 = vmatprep.subr.mxu0 %v2467_v27  ;;  %1874 = vmatprep.subr.mxu1 %v3181_v49 }
 0x267   :  { %644 = vmatpush1.msra.mxu0 %v2471_v28  ;;  %1875 = vmatpush3.msra.mxu1 %v2553_v47 }
 0x268   :  { %645 = vmatprep.subr.mxu0 %v2475_v29  ;;  %1876 = vmatprep.subr.mxu1 %v3181_v49 }
 0x269   :  { %646 = vmatpush1.msra.mxu0 %v3187_v30  ;;  %1877 = vmatpush3.msra.mxu1 %v3188_v31 }
 0x26a   :  { %647 = vmatprep.subr.mxu0 %v3189_v48  ;;  %1878 = vmatprep.subr.mxu1 %v3181_v49 }
 0x26b   :  { %648 = vmatpush1.msra.mxu0 %v3190_v32  ;;  %681 = vmatprep.mubr.f32.mxu0 %v3181_v49 }
 0x26c   :  { %1879 = vmatpush3.msra.mxu1 %v3191_v33  ;;  %1880 = vmatprep.mubr.msk.f32.mxu1 %vm2324_vm0, %v3181_v49 }
 0x26d   :  { %776 = vmatprep.subr.mxu0 %v3192_v63  ;;  %1883 = vmatprep.subr.mxu1 %v3181_v49 }
 0x30c   :  { %v524_v52 = vpop.f32.mrf.mxu0  ;;  %v595_v61 = vpop.f32.mrf.mxu1 }
 0x30d   :  { %v525_v0 = vadd.f32 %v524_v52, %v3185_v55  ;;  %v596_v63 = vadd.f32 %v595_v61, %v2608_v1 }
 0x30e   :  { %v1847_v51 = vpop.f32.mrf.mxu1  ;;  %v526_v50 = vpop.f32.mrf.mxu0 }
 0x30f   :  { %v1570_v53 = vmul.f32 -1.442695, %v525_v0  ;;  %v527_v56 = vadd.f32 %v526_v50, %v2605_v59 }
 0x311   :  { %2098 = vpow2.f32 %v1570_v53  ;;  %v1571_v57 = vmul.f32 -1.442695, %v527_v56 }
 0x313   :  { %2100 = vpow2.f32 %v1571_v57 }
 0x31e   :  { %v2099_v58 = vpop.eup %2098 }
 0x31f   :  { %v605_v62 = vadd.f32 1.0, %v2099_v58 }
 0x320   :  { %v2101_v33 = vpop.eup %2100 }
 0x321   :  { %2102 = vrcp.f32 %v605_v62  ;;  %v606_v30 = vadd.f32 1.0, %v2101_v33  ;;  %v3193_v62 = vld [vmem:[#allocation16_spill] sm:$0xff]  ;;  %v3198_v33 = vld [vmem:[#allocation15_spill] sm:$0xff] }
 0x32e   :  { %v2103_v32 = vpop.eup %2102 }
 0x32f   :  { %v611_v48 = vmul.f32 %v2103_v32, %v596_v63  ;;  %v3197_v32 = vld [vmem:[#allocation20_spill] sm:$0xff] }
 0x331   :  { %v612_v31 = vadd.f32 %v2611_v54, %v611_v48  ;;  %v3196_v48 = vld [vmem:[#allocation18_spill] sm:$0xff] }
 0x333   :  { %2104 = vtanh.f32 %v612_v31  ;;  %v3195_v31 = vld [vmem:[#allocation17_spill] sm:$0xff] }
 0x334   :  { %2106 = vrcp.f32 %v606_v30  ;;  %v3194_v30 = vld [vmem:[#allocation19_spill] sm:$0xff] }
 0x340   :  { %v2105_v52 = vpop.eup %2104 }
 0x341   :  { %v614_v0 = vsub.f32 %v2691_v60, %v2105_v52  ;;  %v2107_v51 = vpop.eup %2106 }
 0x343   :  { %v615_v53 = vmul.f32 %v2107_v51, %v614_v0 }
 0x345   :  { %v2767_v50 = vadd.f32 %v2105_v52, %v615_v53 }
 0x347   :  { %682 = vmatmul.mubr.f32.vlgmr.msra.gmra.mxu0 %v2767_v50  ;;  %1881 = vmatmul.mubr.f32.vlgmr.msra.gmra.mxu1 %v2767_v50 }
 0x348   :  { %777 = vmatpush1.msra.mxu0 %v2370_v2  ;;  %1884 = vmatpush3.msra.mxu1 %v2495_v34 }
 0x349   :  { %778 = vmatprep.subr.mxu0 %v2372_v3  ;;  %1885 = vmatprep.subr.mxu1 %v3181_v49 }
 0x34a   :  { %779 = vmatpush1.msra.mxu0 %v2375_v4  ;;  %1886 = vmatpush3.msra.mxu1 %v2502_v35 }
 0x34b   :  { %780 = vmatprep.subr.mxu0 %v2379_v5  ;;  %1887 = vmatprep.subr.mxu1 %v3181_v49 }
 0x34c   :  { %781 = vmatpush1.msra.mxu0 %v2383_v6  ;;  %1888 = vmatpush3.msra.mxu1 %v2508_v36 }
 0x34d   :  { %782 = vmatprep.subr.mxu0 %v2387_v7  ;;  %1889 = vmatprep.subr.mxu1 %v3181_v49 }
 0x34e   :  { %783 = vmatpush1.msra.mxu0 %v2391_v8  ;;  %1890 = vmatpush3.msra.mxu1 %v2513_v37 }
 0x34f   :  { %784 = vmatprep.subr.mxu0 %v2395_v9  ;;  %1891 = vmatprep.subr.mxu1 %v3181_v49 }
 0x350   :  { %785 = vmatpush1.msra.mxu0 %v2399_v10  ;;  %1892 = vmatpush3.msra.mxu1 %v2517_v38 }
 0x351   :  { %786 = vmatprep.subr.mxu0 %v2403_v11  ;;  %1893 = vmatprep.subr.mxu1 %v3181_v49 }
 0x352   :  { %787 = vmatpush1.msra.mxu0 %v2407_v12  ;;  %1894 = vmatpush3.msra.mxu1 %v2521_v39 }
 0x353   :  { %788 = vmatprep.subr.mxu0 %v2411_v13  ;;  %1895 = vmatprep.subr.mxu1 %v3181_v49 }
 0x354   :  { %789 = vmatpush1.msra.mxu0 %v2415_v14  ;;  %1896 = vmatpush3.msra.mxu1 %v2525_v40 }
 0x355   :  { %790 = vmatprep.subr.mxu0 %v2419_v15  ;;  %1897 = vmatprep.subr.mxu1 %v3181_v49 }
 0x356   :  { %791 = vmatpush1.msra.mxu0 %v2423_v16  ;;  %1898 = vmatpush3.msra.mxu1 %v2529_v41 }
 0x357   :  { %792 = vmatprep.subr.mxu0 %v2427_v17  ;;  %1899 = vmatprep.subr.mxu1 %v3181_v49 }
 0x358   :  { %793 = vmatpush1.msra.mxu0 %v2431_v18  ;;  %1900 = vmatpush3.msra.mxu1 %v2533_v42 }
 0x359   :  { %794 = vmatprep.subr.mxu0 %v2435_v19  ;;  %1901 = vmatprep.subr.mxu1 %v3181_v49 }
 0x35a   :  { %795 = vmatpush1.msra.mxu0 %v2439_v20  ;;  %1902 = vmatpush3.msra.mxu1 %v2537_v43 }
 0x35b   :  { %796 = vmatprep.subr.mxu0 %v2443_v21  ;;  %1903 = vmatprep.subr.mxu1 %v3181_v49 }
 0x35c   :  { %797 = vmatpush1.msra.mxu0 %v2447_v22  ;;  %1904 = vmatpush3.msra.mxu1 %v2541_v44 }
 0x35d   :  { %798 = vmatprep.subr.mxu0 %v2451_v23  ;;  %1905 = vmatprep.subr.mxu1 %v3181_v49 }
 0x35e   :  { %799 = vmatpush1.msra.mxu0 %v2455_v24  ;;  %1906 = vmatpush3.msra.mxu1 %v2545_v45 }
 0x35f   :  { %800 = vmatprep.subr.mxu0 %v2459_v25  ;;  %1907 = vmatprep.subr.mxu1 %v3181_v49 }
 0x360   :  { %801 = vmatpush1.msra.mxu0 %v2463_v26  ;;  %1908 = vmatpush3.msra.mxu1 %v2549_v46 }
 0x361   :  { %802 = vmatprep.subr.mxu0 %v2467_v27  ;;  %1909 = vmatprep.subr.mxu1 %v3181_v49 }
 0x362   :  { %803 = vmatpush1.msra.mxu0 %v2471_v28  ;;  %1910 = vmatpush3.msra.mxu1 %v2553_v47 }
 0x363   :  { %804 = vmatprep.subr.mxu0 %v2475_v29  ;;  %1911 = vmatprep.subr.mxu1 %v3181_v49 }
 0x364   :  { %805 = vmatpush1.msra.mxu0 %v3193_v62  ;;  %1912 = vmatpush3.msra.mxu1 %v3194_v30 }
 0x365   :  { %806 = vmatprep.subr.mxu0 %v3195_v31  ;;  %1913 = vmatprep.subr.mxu1 %v3181_v49 }
 0x366   :  { %807 = vmatpush1.msra.mxu0 %v3196_v48  ;;  %840 = vmatprep.mubr.f32.mxu0 %v3181_v49 }
 0x367   :  { %1914 = vmatpush3.msra.mxu1 %v3197_v32  ;;  %1915 = vmatprep.mubr.msk.f32.mxu1 %vm2324_vm0, %v3181_v49 }
 0x368   :  { %935 = vmatprep.subr.mxu0 %v3198_v33  ;;  %1918 = vmatprep.subr.mxu1 %v3181_v49 }
 0x407   :  { %v683_v63 = vpop.f32.mrf.mxu0  ;;  %v754_v61 = vpop.f32.mrf.mxu1 }
 0x408   :  { %v684_v56 = vadd.f32 %v683_v63, %v3185_v55  ;;  %v755_v33 = vadd.f32 %v754_v61, %v2608_v1  ;;  %v2973_v61 = vld [vmem:[#allocation5 + $0xd8] sm:$0xff] }
 0x409   :  { %v1882_v57 = vpop.f32.mrf.mxu1  ;;  %v685_v52 = vpop.f32.mrf.mxu0 }
 0x40a   :  { %v1572_v58 = vmul.f32 -1.442695, %v684_v56  ;;  %v686_v0 = vadd.f32 %v685_v52, %v2605_v59 }
 0x40c   :  { %2108 = vpow2.f32 %v1572_v58  ;;  %v1573_v51 = vmul.f32 -1.442695, %v686_v0  ;;  %v2981_v0 = vld [vmem:[#allocation5 + $0xc0] sm:$0xff] }
 0x40e   :  { %2110 = vpow2.f32 %v1573_v51  ;;  %v2989_v51 = vld [vmem:[#allocation5 + $0xa8] sm:$0xff] }
 0x419   :  { %v2109_v53 = vpop.eup %2108 }
 0x41a   :  { %v764_v60 = vadd.f32 1.0, %v2109_v53  ;;  %v2997_v53 = vld [vmem:[#allocation5 + $0x90] sm:$0xff] }
 0x41b   :  { %v2111_v32 = vpop.eup %2110 }
 0x41c   :  { %2112 = vrcp.f32 %v764_v60  ;;  %v765_v62 = vadd.f32 1.0, %v2111_v32  ;;  %v2933_v60 = vld [vmem:[#allocation5 + $0x150] sm:$0xff] }
 0x41d   :  { %v2965_v32 = vld [vmem:[#allocation5 + $0xf0] sm:$0xff] }
 0x429   :  { %v2113_v48 = vpop.eup %2112 }
 0x42a   :  { %v770_v31 = vmul.f32 %v2113_v48, %v755_v33  ;;  %v2957_v48 = vld [vmem:[#allocation5 + $0x108] sm:$0xff]  ;;  %v3005_v33 = vld [vmem:[#allocation5 + $0x78] sm:$0xff] }
 0x42c   :  { %v771_v30 = vadd.f32 %v2611_v54, %v770_v31  ;;  %v2949_v31 = vld [vmem:[#allocation5 + $0x120] sm:$0xff] }
 0x42e   :  { %2114 = vtanh.f32 %v771_v30  ;;  %v2941_v30 = vld [vmem:[#allocation5 + $0x138] sm:$0xff] }
 0x42f   :  { %2116 = vrcp.f32 %v765_v62  ;;  %v2937_v62 = vld [vmem:[#allocation5 + $0x140] sm:$0xff] }
 0x43b   :  { %v2115_v63 = vpop.eup %2114 }
 0x43c   :  { %v773_v56 = vsub.f32 %v2767_v50, %v2115_v63  ;;  %v2117_v57 = vpop.eup %2116 }
 0x43e   :  { %v774_v58 = vmul.f32 %v2117_v57, %v773_v56  ;;  %v3021_v56 = vld [vmem:[#allocation5 + $0x48] sm:$0xff]  ;;  %v3029_v57 = vld [vmem:[#allocation5 + $0x30] sm:$0xff] }
 0x440   :  { %v2843_v52 = vadd.f32 %v2115_v63, %v774_v58  ;;  %v3013_v63 = vld [vmem:[#allocation5 + $0x60] sm:$0xff] }
 0x441   :  { %v3035_v58 = vld [vmem:[#allocation5 + $0x20] sm:$0xff] }
 0x442   :  { %841 = vmatmul.mubr.f32.vlgmr.msra.gmra.mxu0 %v2843_v52  ;;  %1916 = vmatmul.mubr.f32.vlgmr.msra.gmra.mxu1 %v2843_v52 }
 0x443   :  { %936 = vmatpush1.msra.mxu0 %v2370_v2  ;;  %1919 = vmatpush3.msra.mxu1 %v2495_v34  ;;  %v3199_v2 = vld [vmem:[#allocation16_spill] sm:$0xff] }
 0x444   :  { %937 = vmatprep.subr.mxu0 %v2372_v3  ;;  %1920 = vmatprep.subr.mxu1 %v3181_v49  ;;  %v3200_v3 = vld [vmem:[#allocation19_spill] sm:$0xff] }
 0x445   :  { %938 = vmatpush1.msra.mxu0 %v2375_v4  ;;  %1921 = vmatpush3.msra.mxu1 %v2502_v35  ;;  %v3201_v4 = vld [vmem:[#allocation17_spill] sm:$0xff] }
 0x446   :  { %939 = vmatprep.subr.mxu0 %v2379_v5  ;;  %1922 = vmatprep.subr.mxu1 %v3181_v49  ;;  %v3202_v5 = vld [vmem:[#allocation18_spill] sm:$0xff] }
 0x447   :  { %940 = vmatpush1.msra.mxu0 %v2383_v6  ;;  %1923 = vmatpush3.msra.mxu1 %v2508_v36  ;;  %v3203_v6 = vld [vmem:[#allocation20_spill] sm:$0xff] }
 0x448   :  { %941 = vmatprep.subr.mxu0 %v2387_v7  ;;  %1924 = vmatprep.subr.mxu1 %v3181_v49  ;;  %v2912_v7 = vld [vmem:[#allocation5 + $0x170] sm:$0xff] }
 0x449   :  { %942 = vmatpush1.msra.mxu0 %v2391_v8  ;;  %1925 = vmatpush3.msra.mxu1 %v2513_v37 }
 0x44a   :  { %943 = vmatprep.subr.mxu0 %v2395_v9  ;;  %1926 = vmatprep.subr.mxu1 %v3181_v49 }
 0x44b   :  { %944 = vmatpush1.msra.mxu0 %v2399_v10  ;;  %1927 = vmatpush3.msra.mxu1 %v2517_v38 }
 0x44c   :  { %945 = vmatprep.subr.mxu0 %v2403_v11  ;;  %1928 = vmatprep.subr.mxu1 %v3181_v49 }
 0x44d   :  { %946 = vmatpush1.msra.mxu0 %v2407_v12  ;;  %1929 = vmatpush3.msra.mxu1 %v2521_v39 }
 0x44e   :  { %947 = vmatprep.subr.mxu0 %v2411_v13  ;;  %1930 = vmatprep.subr.mxu1 %v3181_v49 }
 0x44f   :  { %948 = vmatpush1.msra.mxu0 %v2415_v14  ;;  %1931 = vmatpush3.msra.mxu1 %v2525_v40 }
 0x450   :  { %949 = vmatprep.subr.mxu0 %v2419_v15  ;;  %1932 = vmatprep.subr.mxu1 %v3181_v49 }
 0x451   :  { %950 = vmatpush1.msra.mxu0 %v2423_v16  ;;  %1933 = vmatpush3.msra.mxu1 %v2529_v41 }
 0x452   :  { %951 = vmatprep.subr.mxu0 %v2427_v17  ;;  %1934 = vmatprep.subr.mxu1 %v3181_v49 }
 0x453   :  { %952 = vmatpush1.msra.mxu0 %v2431_v18  ;;  %1935 = vmatpush3.msra.mxu1 %v2533_v42 }
 0x454   :  { %953 = vmatprep.subr.mxu0 %v2435_v19  ;;  %1936 = vmatprep.subr.mxu1 %v3181_v49 }
 0x455   :  { %954 = vmatpush1.msra.mxu0 %v2439_v20  ;;  %1937 = vmatpush3.msra.mxu1 %v2537_v43 }
 0x456   :  { %955 = vmatprep.subr.mxu0 %v2443_v21  ;;  %1938 = vmatprep.subr.mxu1 %v3181_v49 }
 0x457   :  { %956 = vmatpush1.msra.mxu0 %v2447_v22  ;;  %1939 = vmatpush3.msra.mxu1 %v2541_v44 }
 0x458   :  { %957 = vmatprep.subr.mxu0 %v2451_v23  ;;  %1940 = vmatprep.subr.mxu1 %v3181_v49 }
 0x459   :  { %958 = vmatpush1.msra.mxu0 %v2455_v24  ;;  %1941 = vmatpush3.msra.mxu1 %v2545_v45 }
 0x45a   :  { %959 = vmatprep.subr.mxu0 %v2459_v25  ;;  %1942 = vmatprep.subr.mxu1 %v3181_v49 }
 0x45b   :  { %960 = vmatpush1.msra.mxu0 %v2463_v26  ;;  %1943 = vmatpush3.msra.mxu1 %v2549_v46 }
 0x45c   :  { %961 = vmatprep.subr.mxu0 %v2467_v27  ;;  %1944 = vmatprep.subr.mxu1 %v3181_v49 }
 0x45d   :  { %962 = vmatpush1.msra.mxu0 %v2471_v28  ;;  %1945 = vmatpush3.msra.mxu1 %v2553_v47  ;;  %v2929_v47 = vld [vmem:[#allocation5 + $0x158] sm:$0xff] }
 0x45e   :  { %963 = vmatprep.subr.mxu0 %v2475_v29  ;;  %1946 = vmatprep.subr.mxu1 %v3181_v49  ;;  %v2925_v29 = vld [vmem:[#allocation5 + $0x168] sm:$0xff] }
 0x45f   :  { %964 = vmatpush1.msra.mxu0 %v3199_v2  ;;  %1947 = vmatpush3.msra.mxu1 %v3200_v3  ;;  %v3042_v2 = vld [vmem:[#allocation5 + $0x28] sm:$0xff] }
 0x460   :  { %965 = vmatprep.subr.mxu0 %v3201_v4  ;;  %1948 = vmatprep.subr.mxu1 %v3181_v49  ;;  %v3045_v3 = vld [vmem:[#allocation5 + $0x8] sm:$0xff]  ;;  %v3049_v4 = vld [vmem:[#allocation5] sm:$0xff] }
 0x461   :  { %966 = vmatpush1.msra.mxu0 %v3202_v5  ;;  %999 = vmatprep.mubr.f32.mxu0 %v3181_v49  ;;  %v3053_v5 = vld [vmem:[#allocation5 + $0x10] sm:$0xff] }
 0x462   :  { %1949 = vmatpush3.msra.mxu1 %v3203_v6  ;;  %1950 = vmatprep.mubr.msk.f32.mxu1 %vm2324_vm0, %v3181_v49 }
 0x463   :  { %1094 = vmatprep.subr.mxu0 %v2912_v7  ;;  %1953 = vmatprep.subr.mxu1 %v3181_v49 }
 0x502   :  { %v842_v8 = vpop.f32.mrf.mxu0  ;;  %v913_v9 = vpop.f32.mrf.mxu1 }
 0x503   :  { %v843_v10 = vadd.f32 %v842_v8, %v3185_v55  ;;  %v914_v19 = vadd.f32 %v913_v9, %v2608_v1 }
 0x504   :  { %v1917_v11 = vpop.f32.mrf.mxu1  ;;  %v844_v13 = vpop.f32.mrf.mxu0 }
 0x505   :  { %v1574_v12 = vmul.f32 -1.442695, %v843_v10  ;;  %v845_v14 = vadd.f32 %v844_v13, %v2605_v59 }
 0x507   :  { %2118 = vpow2.f32 %v1574_v12  ;;  %v1575_v15 = vmul.f32 -1.442695, %v845_v14 }
 0x509   :  { %2120 = vpow2.f32 %v1575_v15 }
 0x514   :  { %v2119_v16 = vpop.eup %2118 }
 0x515   :  { %v923_v17 = vadd.f32 1.0, %v2119_v16 }
 0x516   :  { %v2121_v18 = vpop.eup %2120 }
 0x517   :  { %2122 = vrcp.f32 %v923_v17  ;;  %v924_v23 = vadd.f32 1.0, %v2121_v18 }
 0x524   :  { %v2123_v20 = vpop.eup %2122 }
 0x525   :  { %v929_v21 = vmul.f32 %v2123_v20, %v914_v19 }
 0x527   :  { %v930_v22 = vadd.f32 %v2611_v54, %v929_v21 }
 0x529   :  { %2124 = vtanh.f32 %v930_v22 }
 0x52a   :  { %2126 = vrcp.f32 %v924_v23 }
 0x536   :  { %v2125_v24 = vpop.eup %2124 }
 0x537   :  { %v932_v25 = vsub.f32 %v2843_v52, %v2125_v24  ;;  %v2127_v26 = vpop.eup %2126 }
 0x539   :  { %v933_v27 = vmul.f32 %v2127_v26, %v932_v25 }
 0x53b   :  { %v2921_v28 = vadd.f32 %v2125_v24, %v933_v27  ;;  %v2193_v27 = vld [vmem:[#allocation5 + $0x178] sm:$0xff] }
 0x53d   :  { %1000 = vmatmul.mubr.f32.vlgmr.msra.gmra.mxu0 %v2921_v28  ;;  %1951 = vmatmul.mubr.f32.vlgmr.msra.gmra.mxu1 %v2921_v28 }
 0x53e   :  { %1095 = vmatpush1.msra.mxu0 %v2925_v29  ;;  %1954 = vmatpush3.msra.mxu1 %v2495_v34  ;;  %v2945_v34 = vld [vmem:[#allocation5 + $0x128] sm:$0xff] }
 0x53f   :  { %1096 = vmatprep.subr.mxu0 %v2929_v47  ;;  %1955 = vmatprep.subr.mxu1 %v3181_v49 }
 0x540   :  { %1097 = vmatpush1.msra.mxu0 %v2933_v60  ;;  %1956 = vmatpush3.msra.mxu1 %v2502_v35  ;;  %v2953_v35 = vld [vmem:[#allocation5 + $0x110] sm:$0xff] }
 0x541   :  { %1098 = vmatprep.subr.mxu0 %v2937_v62  ;;  %1957 = vmatprep.subr.mxu1 %v3181_v49 }
 0x542   :  { %1099 = vmatpush1.msra.mxu0 %v2941_v30  ;;  %1958 = vmatpush3.msra.mxu1 %v2508_v36  ;;  %v2961_v36 = vld [vmem:[#allocation5 + $0xf8] sm:$0xff] }
 0x543   :  { %1100 = vmatprep.subr.mxu0 %v2945_v34  ;;  %1959 = vmatprep.subr.mxu1 %v3181_v49 }
 0x544   :  { %1101 = vmatpush1.msra.mxu0 %v2949_v31  ;;  %1960 = vmatpush3.msra.mxu1 %v2513_v37  ;;  %v2969_v37 = vld [vmem:[#allocation5 + $0xe0] sm:$0xff] }
 0x545   :  { %1102 = vmatprep.subr.mxu0 %v2953_v35  ;;  %1961 = vmatprep.subr.mxu1 %v3181_v49 }
 0x546   :  { %1103 = vmatpush1.msra.mxu0 %v2957_v48  ;;  %1962 = vmatpush3.msra.mxu1 %v2517_v38  ;;  %v2977_v38 = vld [vmem:[#allocation5 + $0xc8] sm:$0xff] }
 0x547   :  { %1104 = vmatprep.subr.mxu0 %v2961_v36  ;;  %1963 = vmatprep.subr.mxu1 %v3181_v49 }
 0x548   :  { %1105 = vmatpush1.msra.mxu0 %v2965_v32  ;;  %1964 = vmatpush3.msra.mxu1 %v2521_v39  ;;  %v2985_v39 = vld [vmem:[#allocation5 + $0xb0] sm:$0xff] }
 0x549   :  { %1106 = vmatprep.subr.mxu0 %v2969_v37  ;;  %1965 = vmatprep.subr.mxu1 %v3181_v49 }
 0x54a   :  { %1107 = vmatpush1.msra.mxu0 %v2973_v61  ;;  %1966 = vmatpush3.msra.mxu1 %v2525_v40  ;;  %v2993_v40 = vld [vmem:[#allocation5 + $0x98] sm:$0xff] }
 0x54b   :  { %1108 = vmatprep.subr.mxu0 %v2977_v38  ;;  %1967 = vmatprep.subr.mxu1 %v3181_v49 }
 0x54c   :  { %1109 = vmatpush1.msra.mxu0 %v2981_v0  ;;  %1968 = vmatpush3.msra.mxu1 %v2529_v41  ;;  %v3001_v41 = vld [vmem:[#allocation5 + $0x80] sm:$0xff] }
 0x54d   :  { %1110 = vmatprep.subr.mxu0 %v2985_v39  ;;  %1969 = vmatprep.subr.mxu1 %v3181_v49 }
 0x54e   :  { %1111 = vmatpush1.msra.mxu0 %v2989_v51  ;;  %1970 = vmatpush3.msra.mxu1 %v2533_v42  ;;  %v3009_v42 = vld [vmem:[#allocation5 + $0x68] sm:$0xff] }
 0x54f   :  { %1112 = vmatprep.subr.mxu0 %v2993_v40  ;;  %1971 = vmatprep.subr.mxu1 %v3181_v49 }
 0x550   :  { %1113 = vmatpush1.msra.mxu0 %v2997_v53  ;;  %1972 = vmatpush3.msra.mxu1 %v2537_v43  ;;  %v3017_v43 = vld [vmem:[#allocation5 + $0x50] sm:$0xff] }
 0x551   :  { %1114 = vmatprep.subr.mxu0 %v3001_v41  ;;  %1973 = vmatprep.subr.mxu1 %v3181_v49 }
 0x552   :  { %1115 = vmatpush1.msra.mxu0 %v3005_v33  ;;  %1974 = vmatpush3.msra.mxu1 %v2541_v44  ;;  %v3025_v44 = vld [vmem:[#allocation5 + $0x38] sm:$0xff] }
 0x553   :  { %1116 = vmatprep.subr.mxu0 %v3009_v42  ;;  %1975 = vmatprep.subr.mxu1 %v3181_v49 }
 0x554   :  { %1117 = vmatpush1.msra.mxu0 %v3013_v63  ;;  %1976 = vmatpush3.msra.mxu1 %v2545_v45  ;;  %v3032_v45 = vld [vmem:[#allocation5 + $0x40] sm:$0xff] }
 0x555   :  { %1118 = vmatprep.subr.mxu0 %v3017_v43  ;;  %1977 = vmatprep.subr.mxu1 %v3181_v49 }
 0x556   :  { %1119 = vmatpush1.msra.mxu0 %v3021_v56  ;;  %1978 = vmatpush3.msra.mxu1 %v2549_v46  ;;  %v3039_v46 = vld [vmem:[#allocation5 + $0x18] sm:$0xff] }
 0x557   :  { %1120 = vmatprep.subr.mxu0 %v3025_v44  ;;  %1979 = vmatprep.subr.mxu1 %v3181_v49 }
 0x558   :  { %1121 = vmatpush1.msra.mxu0 %v3029_v57  ;;  %1980 = vmatpush3.msra.mxu1 %v3032_v45 }
 0x559   :  { %1122 = vmatprep.subr.mxu0 %v3035_v58  ;;  %1981 = vmatprep.subr.mxu1 %v3181_v49 }
 0x55a   :  { %1123 = vmatpush1.msra.mxu0 %v3039_v46  ;;  %1982 = vmatpush3.msra.mxu1 %v3042_v2 }
 0x55b   :  { %1124 = vmatprep.subr.mxu0 %v3045_v3  ;;  %1983 = vmatprep.subr.mxu1 %v3181_v49 }
 0x55c   :  { %1125 = vmatpush1.msra.mxu0 %v3049_v4  ;;  %1158 = vmatprep.mubr.f32.mxu0 %v3181_v49 }
 0x55d   :  { %1984 = vmatpush3.msra.mxu1 %v3053_v5  ;;  %1985 = vmatprep.mubr.msk.f32.mxu1 %vm2324_vm0, %v3181_v49 }
 0x55e   :  { %1253 = vmatprep.subr.mxu0 %v2912_v7  ;;  %1988 = vmatprep.subr.mxu1 %v3181_v49 }
 0x5fd   :  { %v1001_v6 = vpop.f32.mrf.mxu0  ;;  %v1072_v8 = vpop.f32.mrf.mxu1 }
 0x5fe   :  { %v1002_v9 = vadd.f32 %v1001_v6, %v3185_v55  ;;  %v1073_v7 = vadd.f32 %v1072_v8, %v2608_v1  ;;  %v2195_v6 = vld [vmem:[#allocation5 + $0x148] sm:$0xff] }
 0x5ff   :  { %v1952_v10 = vpop.f32.mrf.mxu1  ;;  %v1003_v12 = vpop.f32.mrf.mxu0  ;;  %v1425_v8 = vld [vmem:[#allocation8 + $0x68] sm:$0xff] }
 0x600   :  { %v1576_v11 = vmul.f32 -1.442695, %v1002_v9  ;;  %v1004_v13 = vadd.f32 %v1003_v12, %v2605_v59  ;;  %v1424_v9 = vld [vmem:[#allocation8 + $0x60] sm:$0xff]  ;;  %v1423_v10 = vld [vmem:[#allocation8 + $0x58] sm:$0xff]  ;;  %v1421_v12 = vld [vmem:[#allocation8 + $0x48] sm:$0xff] }
 0x602   :  { %2128 = vpow2.f32 %v1576_v11  ;;  %v1577_v14 = vmul.f32 -1.442695, %v1004_v13  ;;  %v1422_v11 = vld [vmem:[#allocation8 + $0x50] sm:$0xff]  ;;  %v1420_v13 = vld [vmem:[#allocation8 + $0x40] sm:$0xff] }
 0x604   :  { %2130 = vpow2.f32 %v1577_v14  ;;  %v1419_v14 = vld [vmem:[#allocation8 + $0x38] sm:$0xff] }
 0x60f   :  { %v2129_v15 = vpop.eup %2128 }
 0x610   :  { %v1082_v16 = vadd.f32 1.0, %v2129_v15  ;;  %v1418_v15 = vld [vmem:[#allocation8 + $0x30] sm:$0xff] }
 0x611   :  { %v2131_v17 = vpop.eup %2130 }
 0x612   :  { %2132 = vrcp.f32 %v1082_v16  ;;  %v1083_v21 = vadd.f32 1.0, %v2131_v17  ;;  %v1417_v16 = vld [vmem:[#allocation8 + $0x28] sm:$0xff]  ;;  %v1416_v17 = vld [vmem:[#allocation8 + $0x20] sm:$0xff] }
 0x61f   :  { %v2133_v18 = vpop.eup %2132 }
 0x620   :  { %v1088_v19 = vmul.f32 %v2133_v18, %v1073_v7  ;;  %v1415_v7 = vld [vmem:[#allocation8 + $0x18] sm:$0xff]  ;;  %v1414_v18 = vld [vmem:[#allocation8 + $0x10] sm:$0xff] }
 0x622   :  { %v1089_v20 = vadd.f32 %v2611_v54, %v1088_v19  ;;  %v2194_v54 = vld [vmem:[#allocation5 + $0x160] sm:$0xff]  ;;  %v1413_v19 = vld [vmem:[#allocation8 + $0x8] sm:$0xff] }
 0x624   :  { %2134 = vtanh.f32 %v1089_v20  ;;  %v1412_v20 = vld [vmem:[#allocation8] sm:$0xff] }
 0x625   :  { %2136 = vrcp.f32 %v1083_v21  ;;  %v3205_v21 = vld [vmem:[#allocation21_spill] sm:$0xff] }
 0x631   :  { %v2135_v22 = vpop.eup %2134 }
 0x632   :  { %v1091_v23 = vsub.f32 %v2921_v28, %v2135_v22  ;;  %v2137_v24 = vpop.eup %2136 }
 0x634   :  { %v1092_v25 = vmul.f32 %v2137_v24, %v1091_v23 }
 0x636   :  { %v3065_v26 = vadd.f32 %v2135_v22, %v1092_v25 }
 0x638   :  { %1159 = vmatmul.mubr.f32.vlgmr.msra.gmra.mxu0 %v3065_v26  ;;  %1986 = vmatmul.mubr.f32.vlgmr.msra.gmra.mxu1 %v3065_v26 }
 0x639   :  { %1254 = vmatpush1.msra.mxu0 %v2925_v29  ;;  %1989 = vmatpush3.msra.mxu1 %v2193_v27  ;;  %v2196_v29 = vld [vmem:[#allocation5 + $0x130] sm:$0xff] }
 0x63a   :  { %1255 = vmatprep.subr.mxu0 %v2929_v47  ;;  %1990 = vmatprep.subr.mxu1 %v3181_v49  ;;  %v2197_v47 = vld [vmem:[#allocation5 + $0x118] sm:$0xff] }
 0x63b   :  { %1256 = vmatpush1.msra.mxu0 %v2933_v60  ;;  %1991 = vmatpush3.msra.mxu1 %v2194_v54  ;;  %v2198_v60 = vld [vmem:[#allocation5 + $0x100] sm:$0xff] }
 0x63c   :  { %1257 = vmatprep.subr.mxu0 %v2937_v62  ;;  %1992 = vmatprep.subr.mxu1 %v3181_v49  ;;  %v2199_v62 = vld [vmem:[#allocation5 + $0xe8] sm:$0xff] }
 0x63d   :  { %1258 = vmatpush1.msra.mxu0 %v2941_v30  ;;  %1993 = vmatpush3.msra.mxu1 %v2195_v6  ;;  %v2200_v30 = vld [vmem:[#allocation5 + $0xd0] sm:$0xff] }
 0x63e   :  { %1259 = vmatprep.subr.mxu0 %v2945_v34  ;;  %1994 = vmatprep.subr.mxu1 %v3181_v49  ;;  %v2201_v34 = vld [vmem:[#allocation5 + $0xb8] sm:$0xff] }
 0x63f   :  { %1260 = vmatpush1.msra.mxu0 %v2949_v31  ;;  %1995 = vmatpush3.msra.mxu1 %v2196_v29  ;;  %v2202_v31 = vld [vmem:[#allocation5 + $0xa0] sm:$0xff] }
 0x640   :  { %1261 = vmatprep.subr.mxu0 %v2953_v35  ;;  %1996 = vmatprep.subr.mxu1 %v3181_v49  ;;  %v2203_v35 = vld [vmem:[#allocation5 + $0x88] sm:$0xff] }
 0x641   :  { %1262 = vmatpush1.msra.mxu0 %v2957_v48  ;;  %1997 = vmatpush3.msra.mxu1 %v2197_v47  ;;  %v2204_v48 = vld [vmem:[#allocation5 + $0x70] sm:$0xff] }
 0x642   :  { %1263 = vmatprep.subr.mxu0 %v2961_v36  ;;  %1998 = vmatprep.subr.mxu1 %v3181_v49  ;;  %v2205_v36 = vld [vmem:[#allocation5 + $0x58] sm:$0xff] }
 0x643   :  { %1264 = vmatpush1.msra.mxu0 %v2965_v32  ;;  %1999 = vmatpush3.msra.mxu1 %v2198_v60  ;;  %v1427_v32 = vld [vmem:[#allocation8 + $0x78] sm:$0xff] }
 0x644   :  { %1265 = vmatprep.subr.mxu0 %v2969_v37  ;;  %2000 = vmatprep.subr.mxu1 %v3181_v49 }
 0x645   :  { %1266 = vmatpush1.msra.mxu0 %v2973_v61  ;;  %2001 = vmatpush3.msra.mxu1 %v2199_v62 }
 0x646   :  { %1267 = vmatprep.subr.mxu0 %v2977_v38  ;;  %2002 = vmatprep.subr.mxu1 %v3181_v49 }
 0x647   :  { %1268 = vmatpush1.msra.mxu0 %v2981_v0  ;;  %2003 = vmatpush3.msra.mxu1 %v2200_v30 }
 0x648   :  { %1269 = vmatprep.subr.mxu0 %v2985_v39  ;;  %2004 = vmatprep.subr.mxu1 %v3181_v49 }
 0x649   :  { %1270 = vmatpush1.msra.mxu0 %v2989_v51  ;;  %2005 = vmatpush3.msra.mxu1 %v2201_v34 }
 0x64a   :  { %1271 = vmatprep.subr.mxu0 %v2993_v40  ;;  %2006 = vmatprep.subr.mxu1 %v3181_v49 }
 0x64b   :  { %1272 = vmatpush1.msra.mxu0 %v2997_v53  ;;  %2007 = vmatpush3.msra.mxu1 %v2202_v31 }
 0x64c   :  { %1273 = vmatprep.subr.mxu0 %v3001_v41  ;;  %2008 = vmatprep.subr.mxu1 %v3181_v49 }
 0x64d   :  { %1274 = vmatpush1.msra.mxu0 %v3005_v33  ;;  %2009 = vmatpush3.msra.mxu1 %v2203_v35 }
 0x64e   :  { %1275 = vmatprep.subr.mxu0 %v3009_v42  ;;  %2010 = vmatprep.subr.mxu1 %v3181_v49 }
 0x64f   :  { %1276 = vmatpush1.msra.mxu0 %v3013_v63  ;;  %2011 = vmatpush3.msra.mxu1 %v2204_v48 }
 0x650   :  { %1277 = vmatprep.subr.mxu0 %v3017_v43  ;;  %2012 = vmatprep.subr.mxu1 %v3181_v49 }
 0x651   :  { %1278 = vmatpush1.msra.mxu0 %v3021_v56  ;;  %2013 = vmatpush3.msra.mxu1 %v2205_v36  ;;  %v3124_v56 = vld [vmem:[#allocation7 + $0x1] ss:$0 sm:$0xff] }
 0x652   :  { %1279 = vmatprep.subr.mxu0 %v3025_v44  ;;  %2014 = vmatprep.subr.mxu1 %v3181_v49 }
 0x653   :  { %1280 = vmatpush1.msra.mxu0 %v3029_v57  ;;  %2015 = vmatpush3.msra.mxu1 %v3032_v45 }
 0x654   :  { %1281 = vmatprep.subr.mxu0 %v3035_v58  ;;  %2016 = vmatprep.subr.mxu1 %v3181_v49 }
 0x655   :  { %1282 = vmatpush1.msra.mxu0 %v3039_v46  ;;  %2017 = vmatpush3.msra.mxu1 %v3042_v2 }
 0x656   :  { %1283 = vmatprep.subr.mxu0 %v3045_v3  ;;  %2018 = vmatprep.subr.mxu1 %v3181_v49 }
 0x657   :  { %1284 = vmatpush1.msra.mxu0 %v3049_v4  ;;  %1317 = vmatprep.mubr.f32.mxu0 %v3181_v49  ;;  %v1426_v4 = vld [vmem:[#allocation8 + $0x70] sm:$0xff] }
 0x658   :  { %2019 = vmatpush3.msra.mxu1 %v3053_v5  ;;  %2020 = vmatprep.mubr.msk.f32.mxu1 %vm2324_vm0, %v3181_v49  ;;  %v3204_v5 = vld [vmem:[#allocation22_spill] sm:$0xff] }
 0x659   :  { %2023 = vmatprep.subr.mxu0 %v1427_v32 }
 0x6f8   :  { %v1160_v37 = vpop.f32.mrf.mxu0  ;;  %v1231_v61 = vpop.f32.mrf.mxu1 }
 0x6f9   :  { %v1161_v38 = vadd.f32 %v1160_v37, %v3185_v55  ;;  %v1232_v49 = vadd.f32 %v1231_v61, %v2608_v1 }
 0x6fa   :  { %v1987_v0 = vpop.f32.mrf.mxu1  ;;  %v1162_v51 = vpop.f32.mrf.mxu0 }
 0x6fb   :  { %v1578_v39 = vmul.f32 -1.442695, %v1161_v38  ;;  %v1163_v40 = vadd.f32 %v1162_v51, %v2605_v59 }
 0x6fd   :  { %2138 = vpow2.f32 %v1578_v39  ;;  %v1579_v53 = vmul.f32 -1.442695, %v1163_v40 }
 0x6ff   :  { %2140 = vpow2.f32 %v1579_v53 }
 0x70a   :  { %v2139_v41 = vpop.eup %2138 }
 0x70b   :  { %v1241_v33 = vadd.f32 1.0, %v2139_v41 }
 0x70c   :  { %v2141_v42 = vpop.eup %2140 }
 0x70d   :  { %2142 = vrcp.f32 %v1241_v33  ;;  %v1242_v57 = vadd.f32 1.0, %v2141_v42 }
 0x71a   :  { %v2143_v63 = vpop.eup %2142 }
 0x71b   :  { %v1247_v43 = vmul.f32 %v2143_v63, %v1232_v49 }
 0x71d   :  { %v1248_v44 = vadd.f32 %v3124_v56, %v1247_v43 }
 0x71f   :  { %2144 = vtanh.f32 %v1248_v44 }
 0x720   :  { %2146 = vrcp.f32 %v1242_v57 }
 0x72c   :  { %v2145_v45 = vpop.eup %2144 }
 0x72d   :  { %v1250_v58 = vsub.f32 %v3065_v26, %v2145_v45  ;;  %v2147_v46 = vpop.eup %2146 }
 0x72f   :  { %v1251_v2 = vmul.f32 %v2147_v46, %v1250_v58 }
 0x731   :  { %v3128_v3 = vadd.f32 %v2145_v45, %v1251_v2 }
 0x733   :  { %1318 = vmatmul.mubr.f32.vlgmr.msra.gmra.mxu0 %v3128_v3  ;;  %2021 = vmatmul.mubr.f32.vlgmr.msra.gmra.mxu1 %v3128_v3 }
 0x734   :  { %2024 = vmatpush3.msra.mxu0 %v1427_v32  ;;  %2055 = vmatprep.mubr.f32.mxu0 %v3204_v5 }
 0x735   :  { %2025 = vmatprep.subr.mxu0 %v1426_v4 }
 0x736   :  { %2026 = vmatpush3.msra.mxu0 %v1426_v4 }
 0x737   :  { %2027 = vmatprep.subr.mxu0 %v1425_v8 }
 0x738   :  { %2028 = vmatpush3.msra.mxu0 %v1425_v8 }
 0x739   :  { %2029 = vmatprep.subr.mxu0 %v1424_v9 }
 0x73a   :  { %2030 = vmatpush3.msra.mxu0 %v1424_v9 }
 0x73b   :  { %2031 = vmatprep.subr.mxu0 %v1423_v10 }
 0x73c   :  { %2032 = vmatpush3.msra.mxu0 %v1423_v10 }
 0x73d   :  { %2033 = vmatprep.subr.mxu0 %v1422_v11 }
 0x73e   :  { %2034 = vmatpush3.msra.mxu0 %v1422_v11 }
 0x73f   :  { %2035 = vmatprep.subr.mxu0 %v1421_v12 }
 0x740   :  { %2036 = vmatpush3.msra.mxu0 %v1421_v12 }
 0x741   :  { %2037 = vmatprep.subr.mxu0 %v1420_v13 }
 0x742   :  { %2038 = vmatpush3.msra.mxu0 %v1420_v13 }
 0x743   :  { %2039 = vmatprep.subr.mxu0 %v1419_v14 }
 0x744   :  { %2040 = vmatpush3.msra.mxu0 %v1419_v14 }
 0x745   :  { %2041 = vmatprep.subr.mxu0 %v1418_v15 }
 0x746   :  { %2042 = vmatpush3.msra.mxu0 %v1418_v15 }
 0x747   :  { %2043 = vmatprep.subr.mxu0 %v1417_v16 }
 0x748   :  { %2044 = vmatpush3.msra.mxu0 %v1417_v16 }
 0x749   :  { %2045 = vmatprep.subr.mxu0 %v1416_v17 }
 0x74a   :  { %2046 = vmatpush3.msra.mxu0 %v1416_v17 }
 0x74b   :  { %2047 = vmatprep.subr.mxu0 %v1415_v7 }
 0x74c   :  { %2048 = vmatpush3.msra.mxu0 %v1415_v7 }
 0x74d   :  { %2049 = vmatprep.subr.mxu0 %v1414_v18 }
 0x74e   :  { %2050 = vmatpush3.msra.mxu0 %v1414_v18 }
 0x74f   :  { %2051 = vmatprep.subr.mxu0 %v1413_v19 }
 0x750   :  { %2052 = vmatpush3.msra.mxu0 %v1413_v19 }
 0x751   :  { %2053 = vmatprep.subr.mxu0 %v1412_v20 }
 0x752   :  { %2054 = vmatpush3.msra.mxu0 %v1412_v20 }
 0x753   :  { %2056 = vmatmul.mubr.f32.vlgmr.msra.gmra.mxu0 %v3205_v21 }
 0x754   :  { %2058 = vmatprep.mubr.f32.mxu0 %v2767_v50 }
 0x757   :  { %2059 = vmatmul.mubr.f32.gmra.mxu0 %v2843_v52  ;;  %v1582_v52 = vld [vmem:[#allocation8 + $0x80] ss:$0 sm:$0xff] }
 0x758   :  { %2061 = vmatprep.mubr.f32.mxu0 %v2921_v28 }
 0x75b   :  { %2062 = vmatmul.mubr.f32.gmra.mxu0 %v3065_v26 }
 0x75c   :  { %2064 = vmatprep.mubr.f32.mxu0 %v3128_v3 }
 0x7f3   :  { %v1319_v22 = vpop.f32.mrf.mxu0  ;;  %v1390_v23 = vpop.f32.mrf.mxu1 }
 0x7f4   :  { %v1320_v24 = vadd.f32 %v1319_v22, %v3185_v55  ;;  %v1391_v60 = vadd.f32 %v1390_v23, %v2608_v1 }
 0x7f5   :  { %v2022_v25 = vpop.f32.mrf.mxu1  ;;  %v1321_v54 = vpop.f32.mrf.mxu0 }
 0x7f6   :  { %v1580_v27 = vmul.f32 -1.442695, %v1320_v24  ;;  %v1322_v6 = vadd.f32 %v1321_v54, %v2605_v59 }
 0x7f8   :  { %2148 = vpow2.f32 %v1580_v27  ;;  %v1581_v29 = vmul.f32 -1.442695, %v1322_v6 }
 0x7fa   :  { %2150 = vpow2.f32 %v1581_v29 }
 0x805   :  { %v2149_v50 = vpop.eup %2148 }
 0x806   :  { %v1400_v47 = vadd.f32 1.0, %v2149_v50 }
 0x807   :  { %v2151_v26 = vpop.eup %2150 }
 0x808   :  { %2152 = vrcp.f32 %v1400_v47  ;;  %v1401_v59 = vadd.f32 1.0, %v2151_v26 }
 0x813   :  { %v2057_v28 = vpop.f32.mrf.mxu0 }
 0x814   :  { %v1505_v62 = vadd.f32 %v2057_v28, %v1582_v52 }
 0x815   :  { %v2153_v30 = vpop.eup %2152  ;;  %v1499_v34 = vpop.f32.mrf.mxu0 }
 0x816   :  { %v1406_v55 = vmul.f32 %v2153_v30, %v1391_v60  ;;  %1539 = vst [vmem:[#allocation10 + $0x8] sm:$0xff] %v1505_v62  ;;  %v1500_v31 = vadd.f32 %v1582_v52, %v1499_v34 }
 0x817   :  { %v2060_v35 = vpop.f32.mrf.mxu0 }
 0x818   :  { %v1407_v48 = vadd.f32 %v3124_v56, %v1406_v55  ;;  %1538 = vst [vmem:[#allocation10] sm:$0xff] %v1500_v31  ;;  %v1515_v36 = vadd.f32 %v2060_v35, %v1582_v52 }
 0x819   :  { %v1509_v32 = vpop.f32.mrf.mxu0 }
 0x81a   :  { %2154 = vtanh.f32 %v1407_v48  ;;  %1541 = vst [vmem:[#allocation10 + $0x18] sm:$0xff] %v1515_v36  ;;  %v1510_v37 = vadd.f32 %v1582_v52, %v1509_v32 }
 0x81b   :  { %v2063_v61 = vpop.f32.mrf.mxu0  ;;  %2156 = vrcp.f32 %v1401_v59 }
 0x81c   :  { %1540 = vst [vmem:[#allocation10 + $0x10] sm:$0xff] %v1510_v37  ;;  %v1525_v1 = vadd.f32 %v2063_v61, %v1582_v52 }
 0x81d   :  { %v1519_v38 = vpop.f32.mrf.mxu0 }
 0x81e   :  { %1543 = vst [vmem:[#allocation10 + $0x28] sm:$0xff] %v1525_v1  ;;  %v1520_v0 = vadd.f32 %v1582_v52, %v1519_v38 }
 0x820   :  { %1542 = vst [vmem:[#allocation10 + $0x20] sm:$0xff] %v1520_v0 }
 0x827   :  { %v2155_v39 = vpop.eup %2154 }
 0x828   :  { %v1409_v51 = vsub.f32 %v3128_v3, %v2155_v39  ;;  %v2157_v40 = vpop.eup %2156 }
 0x82a   :  { %v1410_v53 = vmul.f32 %v2157_v40, %v1409_v51 }
 0x82c   :  { %v1411_v41 = vadd.f32 %v2155_v39, %v1410_v53 }
 0x82e   :  { %2065 = vmatmul.mubr.f32.gmra.mxu0 %v1411_v41 }
 0x8ee   :  { %v2066_v33 = vpop.f32.mrf.mxu0 }
 0x8ef   :  { %v1535_v42 = vadd.f32 %v2066_v33, %v1582_v52 }
 0x8f0   :  { %v1529_v49 = vpop.f32.mrf.mxu0 }
 0x8f1   :  { %1545 = vst [vmem:[#allocation10 + $0x38] sm:$0xff] %v1535_v42  ;;  %v1530_v63 = vadd.f32 %v1582_v52, %v1529_v49 }
 0x8f3   :  { %1544 = vst [vmem:[#allocation10 + $0x30] sm:$0xff] %v1530_v63 }
 0x8f4   :  { %2298 = shalt.err (!%p2295_p10)
}
 0x8f5   :  { %1557 = dma.vmem_to_hbm [thread:$0]  %s1552_s3, 1024, %s3154_s4, [#allocation4], %s2321_s0, %s2321_s0, %s2322_s8  }
 0x8f6   :  { %2313 = dma.done.wait [#allocation4], 1024  }
 0x8f7   :  { %2314 = vsyncadd [#allocation4], 4294966272 }
 0x8f8   :  { %1561 = vsyncpa [#allocation3], 1 }
 0x8f9   :  { %1562 = vsyncpa [#allocation6], 1 }
 0x8fa   :  { %1563 = vsyncpa [#allocation9], 1 }
 0x8fb   :  { %1564 = vsyncpa [#allocation4], 1 }

</bundles_post_ra>
